<compile_context>
chip_gen: v7x
topology: tpu7x:2x2x1
jax: 0.10.0
libtpu: 0.0.40
codegen_flags: <defaults>
</compile_context>

<pallas_src>
import functools

import jax
import jax.numpy as jnp
from jax import lax
from jax.experimental import pallas as pl
from jax.experimental.pallas import tpu as pltpu


# ----------------------------- Pallas kernel --------------------------------
def _fft_decoder_kernel(
    x_ref, mask_ref, wqkv_ref, qkvb_ref, wo_ref, vec_ref, c1w_ref, c1b_ref,
    c2w_ref, out_ref,
    *, n_blocks, n_heads, d_model, k1, k2, batch, seq_len, eps=1e-5,
):
    D = d_model
    dh = D // n_heads
    BL = batch * seq_len

    h = x_ref[...].astype(jnp.float32)          # (BL, D); already x + pos_emb
    mask_bias = mask_ref[...]                   # (BL, BL) additive mask

    # In-batch position of every stacked row (conv boundary masking).
    row = lax.broadcasted_iota(jnp.int32, (BL, 1), 0)
    pos = row % seq_len

    def layer_norm(z, g, b):
        mu = jnp.mean(z, axis=-1, keepdims=True)
        var = jnp.mean((z - mu) ** 2, axis=-1, keepdims=True)
        return (z - mu) * lax.rsqrt(var + eps) * g + b

    def conv_taps(z, ksize):
        # torch Conv1d "same" (odd k): build (BL, ksize*C) with tap t
        # (offset t-pad) occupying lanes [t*C : (t+1)*C].  Batch boundaries
        # handled by masking rows whose in-batch position falls outside [0,L).
        if ksize == 1:
            return z
        pad = (ksize - 1) // 2
        cols = []
        for t in range(ksize):
            off = t - pad
            if off == 0:
                cols.append(z)
            else:
                zt = pltpu.roll(z, shift=(-off) % BL, axis=0)
                valid = jnp.logical_and(pos + off >= 0, pos + off < seq_len)
                cols.append(jnp.where(valid, zt, 0.0))
        return jnp.concatenate(cols, axis=-1)

    for blk in range(n_blocks):                 # NB is static -> unrolled
        vec = vec_ref[blk]                      # (6, D) f32
        bo, ln1g, ln1b = vec[0:1], vec[1:2], vec[2:3]
        ln2g, ln2b, c2b = vec[3:4], vec[4:5], vec[5:6]
        c1b = c1b_ref[blk]                      # (1, d_ff) f32

        hb = h.astype(jnp.bfloat16)

        # ---- fused Q|K|V projection (all heads, one MXU push; scale folded
        # ---- into the Q columns in the wrapper) ----------------------------
        qkv = jnp.dot(hb, wqkv_ref[blk],
                      preferred_element_type=jnp.float32) + qkvb_ref[blk]

        ctx_heads = []
        for hi in range(n_heads):
            q = qkv[:, hi * dh:(hi + 1) * dh].astype(jnp.bfloat16)
            k = qkv[:, D + hi * dh:D + (hi + 1) * dh].astype(jnp.bfloat16)
            v = qkv[:, 2 * D + hi * dh:2 * D + (hi + 1) * dh].astype(jnp.bfloat16)
            # contract last dims of q and k (no explicit transpose)
            s = lax.dot_general(q, k, (((1,), (1,)), ((), ())),
                                preferred_element_type=jnp.float32)  # (BL, BL)
            s = s + mask_bias
            s = s - jnp.max(s, axis=-1, keepdims=True)
            p = jnp.exp(s)
            p = p * pl.reciprocal(jnp.sum(p, axis=-1, keepdims=True),
                                  approx=True)
            ctx_heads.append(jnp.dot(p.astype(jnp.bfloat16), v,
                                     preferred_element_type=jnp.float32))
        ctx = jnp.concatenate(ctx_heads, axis=-1)          # (BL, D)

        attn = jnp.dot(ctx.astype(jnp.bfloat16), wo_ref[blk],
                       preferred_element_type=jnp.float32) + bo

        h1 = layer_norm(attn + h, ln1g, ln1b)

        # ---- position-wise conv feed-forward (taps fused into one matmul) --
        y = jnp.dot(conv_taps(h1, k1).astype(jnp.bfloat16), c1w_ref[blk],
                    preferred_element_type=jnp.float32) + c1b
        y = jnp.maximum(y, 0.0)                             # ReLU
        y = jnp.dot(conv_taps(y, k2).astype(jnp.bfloat16), c2w_ref[blk],
                    preferred_element_type=jnp.float32) + c2b

        h = layer_norm(y + h1, ln2g, ln2b)

    out_ref[...] = h.astype(out_ref.dtype)


# ----------------------------- wrapper ---------------------------------------
def fastspeech_decoder(x, mel_pos, params, pos_table, *, padding_idx, n_heads,
                       k1, k2):
    B, L, D = x.shape
    NB = params["wq"].shape[0]
    d_ff = params["c1w"].shape[-1]
    dh = D // n_heads
    scale = 1.0 / (dh ** 0.5)
    BL = B * L
    qkv_w = 3 * D
    qkv_pad = max(128, qkv_w)      # lane-dense fused QKV output

    # Glue (plain JAX): embedding gather + pos add; flatten batch into rows.
    pos_emb = jnp.take(pos_table, mel_pos, axis=0).astype(jnp.float32)
    x_in = (x.astype(jnp.float32) + pos_emb).reshape(BL, D)

    # (BL, BL) additive attention mask: a key is attendable only if it is a
    # non-padded frame AND belongs to the same batch item as the query.
    batch_ids = jnp.repeat(jnp.arange(B, dtype=jnp.int32), L)
    key_ok = mel_pos.reshape(-1) != padding_idx
    same = batch_ids[:, None] == batch_ids[None, :]
    mask_bias = jnp.where(jnp.logical_and(same, key_ok[None, :]),
                          0.0, -1e9).astype(jnp.float32)

    # Fused Q|K|V weight (scale folded into Q), padded to >=128 output lanes.
    wqkv = jnp.concatenate([params["wq"] * scale, params["wk"], params["wv"]],
                           axis=-1)                               # (NB, D, 3D)
    wqkv = jnp.pad(wqkv, ((0, 0), (0, 0), (0, qkv_pad - qkv_w))
                   ).astype(jnp.bfloat16)
    qkvb = jnp.concatenate([params["bq"] * scale, params["bk"], params["bv"]],
                           axis=-1)                               # (NB, 1, 3D)
    qkvb = jnp.pad(qkvb, ((0, 0), (0, 0), (0, qkv_pad - qkv_w))
                   ).astype(jnp.float32)

    wo = params["wo"].astype(jnp.bfloat16)                        # (NB, D, D)

    # All D-wide per-block vectors grouped into one array (natural widths).
    vec_pack = jnp.concatenate(
        [params["bo"], params["ln1g"], params["ln1b"],
         params["ln2g"], params["ln2b"], params["c2b"]],
        axis=1).astype(jnp.float32)                               # (NB, 6, D)

    # Conv weights reshaped so taps stack along the contraction dim.
    c1w = params["c1w"].reshape(NB, k1 * D, d_ff).astype(jnp.bfloat16)
    c1b = params["c1b"].astype(jnp.float32)                       # (NB, 1, dff)
    c2w = params["c2w"].reshape(NB, k2 * d_ff, D).astype(jnp.bfloat16)

    kern = functools.partial(_fft_decoder_kernel,
                             n_blocks=NB, n_heads=n_heads, d_model=D,
                             k1=k1, k2=k2, batch=B, seq_len=L)

    vmem = pl.BlockSpec(memory_space=pltpu.MemorySpace.VMEM)
    out = pl.pallas_call(
        kern,
        out_shape=jax.ShapeDtypeStruct((BL, D), x.dtype),
        in_specs=[vmem] * 9,
        out_specs=vmem,
        compiler_params=pltpu.CompilerParams(
            vmem_limit_bytes=32 * 1024 * 1024),
    )(x_in, mask_bias, wqkv, qkvb, wo, vec_pack, c1w, c1b, c2w)
    return out.reshape(B, L, D)


# ----------------------------- pure-JAX reference ----------------------------
def reference_decoder(x, mel_pos, params, pos_table, *, padding_idx, n_heads,
                      k1, k2, eps=1e-5):
    B, L, D = x.shape
    dh = D // n_heads
    scale = 1.0 / (dh ** 0.5)
    pos_emb = jnp.take(pos_table, mel_pos, axis=0)
    mask_bias = jnp.where(mel_pos == padding_idx, -1e9, 0.0)[:, None, :]
    h = (x + pos_emb).astype(jnp.float32)

    def ln(z, g, b):
        mu = jnp.mean(z, -1, keepdims=True)
        var = jnp.mean((z - mu) ** 2, -1, keepdims=True)
        return (z - mu) * jax.lax.rsqrt(var + eps) * g + b

    def conv_same(z, w, b, ks):  # z: (B, L, C_in), w: (ks, C_in, C_out)
        pad = (ks - 1) // 2
        zp = jnp.pad(z, ((0, 0), (pad, pad), (0, 0)))
        acc = jnp.zeros(z.shape[:2] + (w.shape[-1],), jnp.float32)
        for t in range(ks):
            acc = acc + jnp.einsum("blc,cd->bld", zp[:, t:t + z.shape[1]], w[t])
        return acc + b

    with jax.default_matmul_precision("highest"):
        for j in range(params["wq"].shape[0]):
            q = h @ params["wq"][j] + params["bq"][j, 0]
            k = h @ params["wk"][j] + params["bk"][j, 0]
            v = h @ params["wv"][j] + params["bv"][j, 0]
            qh = q.reshape(B, L, n_heads, dh).transpose(0, 2, 1, 3)
            kh = k.reshape(B, L, n_heads, dh).transpose(0, 2, 1, 3)
            vh = v.reshape(B, L, n_heads, dh).transpose(0, 2, 1, 3)
            s = jnp.einsum("bhqd,bhkd->bhqk", qh, kh) * scale
            s = s + mask_bias[:, None, :, :]
            p = jax.nn.softmax(s, axis=-1)
            o = jnp.einsum("bhqk,bhkd->bhqd", p, vh)
            o = o.transpose(0, 2, 1, 3).reshape(B, L, D)
            o = o @ params["wo"][j] + params["bo"][j, 0]
            h1 = ln(o + h, params["ln1g"][j, 0], params["ln1b"][j, 0])
            y = conv_same(h1, params["c1w"][j], params["c1b"][j, 0], k1)
            y = jnp.maximum(y, 0.0)
            y = conv_same(y, params["c2w"][j], params["c2b"][j, 0], k2)
            h = ln(y + h1, params["ln2g"][j, 0], params["ln2b"][j, 0])
    return h.astype(x.dtype)


# ----------------------------- params / main ---------------------------------
def init_params(key, n_blocks, D, d_ff, k1, k2):
    ks = jax.random.split(key, 8)
    sd = 0.05
    p = {
        "wq": sd * jax.random.normal(ks[0], (n_blocks, D, D), jnp.float32),
        "wk": sd * jax.random.normal(ks[1], (n_blocks, D, D), jnp.float32),
        "wv": sd * jax.random.normal(ks[2], (n_blocks, D, D), jnp.float32),
        "wo": sd * jax.random.normal(ks[3], (n_blocks, D, D), jnp.float32),
        "bq": jnp.zeros((n_blocks, 1, D), jnp.float32),
        "bk": jnp.zeros((n_blocks, 1, D), jnp.float32),
        "bv": jnp.zeros((n_blocks, 1, D), jnp.float32),
        "bo": jnp.zeros((n_blocks, 1, D), jnp.float32),
        "ln1g": jnp.ones((n_blocks, 1, D), jnp.float32),
        "ln1b": jnp.zeros((n_blocks, 1, D), jnp.float32),
        "ln2g": jnp.ones((n_blocks, 1, D), jnp.float32),
        "ln2b": jnp.zeros((n_blocks, 1, D), jnp.float32),
        "c1w": sd * jax.random.normal(ks[4], (n_blocks, k1, D, d_ff), jnp.float32),
        "c1b": 0.01 * jnp.ones((n_blocks, 1, d_ff), jnp.float32),
        "c2w": sd * jax.random.normal(ks[5], (n_blocks, k2, d_ff, D), jnp.float32),
        "c2b": 0.01 * jnp.ones((n_blocks, 1, D), jnp.float32),
    }
    return p


if __name__ == "__main__":
    # Module config (small, consistent with FastSpeechDecoder.__init__):
    embed_dim = 32
    n_heads = 2
    padding_idx = 0
    max_seq_len = 16
    n_blocks = 2
    dropout = 0.1                      # inference -> identity
    feed_forward_args = {"hidden_dim": 64, "kernel_sizes": (3, 1)}
    d_ff = feed_forward_args["hidden_dim"]
    k1, k2 = feed_forward_args["kernel_sizes"]

    B, L = 2, 8

    key = jax.random.PRNGKey(0)
    k_x, k_pos, k_par = jax.random.split(key, 3)

    x = jax.random.normal(k_x, (B, L, embed_dim), jnp.float32)
    # mel positions: 1..len, padding_idx (=0) for padded frames
    mel_pos = jnp.array([[1, 2, 3, 4, 5, 6, 7, 8],
                         [1, 2, 3, 4, 5, 6, 0, 0]], dtype=jnp.int32)

    # nn.Embedding(max_seq_len + 1, embed_dim, padding_idx) table; pad row = 0.
    pos_table = 0.1 * jax.random.normal(
        k_pos, (max_seq_len + 1, embed_dim), jnp.float32)
    pos_table = pos_table.at[padding_idx].set(0.0)

    params = init_params(k_par, n_blocks, embed_dim, d_ff, k1, k2)

    out = fastspeech_decoder(x, mel_pos, params, pos_table,
                             padding_idx=padding_idx, n_heads=n_heads,
                             k1=k1, k2=k2)
    out = jax.block_until_ready(out)

    ref = reference_decoder(x, mel_pos, params, pos_table,
                            padding_idx=padding_idx, n_heads=n_heads,
                            k1=k1, k2=k2)
    assert out.shape == (B, L, embed_dim)
    assert jnp.allclose(out, ref, rtol=2e-2, atol=2e-2), (
        f"max abs diff {jnp.max(jnp.abs(out - ref))}")

    print("KERNEL_OK")
</pallas_src>

<mosaic_0001>
module attributes {stable_mosaic.version = 11 : i64} {
  func.func @_fft_decoder_kernel(%arg0: memref<16x32xf32, #tpu.memory_space<vmem>>, %arg1: memref<16x16xf32, #tpu.memory_space<vmem>>, %arg2: memref<2x32x128xbf16, #tpu.memory_space<vmem>>, %arg3: memref<2x1x128xf32, #tpu.memory_space<vmem>>, %arg4: memref<2x32x32xbf16, #tpu.memory_space<vmem>>, %arg5: memref<2x6x32xf32, #tpu.memory_space<vmem>>, %arg6: memref<2x96x64xbf16, #tpu.memory_space<vmem>>, %arg7: memref<2x1x64xf32, #tpu.memory_space<vmem>>, %arg8: memref<2x64x32xbf16, #tpu.memory_space<vmem>>, %arg9: memref<16x32xf32, #tpu.memory_space<vmem>>) attributes {dimension_semantics = [], scalar_prefetch = 0 : i64, scratch_operands = 0 : i64, tpu.core_type = #tpu.core_type<tc>} {
    %c0 = arith.constant 0 : index
    %c0_0 = arith.constant 0 : index
    %0 = vector.load %arg0[%c0, %c0_0] : memref<16x32xf32, #tpu.memory_space<vmem>>, vector<16x32xf32>
    %c0_1 = arith.constant 0 : index
    %c0_2 = arith.constant 0 : index
    %1 = vector.load %arg1[%c0_1, %c0_2] : memref<16x16xf32, #tpu.memory_space<vmem>>, vector<16x16xf32>
    %2 = tpu.iota {dimensions = array<i32: 0>} : vector<16x1xi32>
    %c8_i32 = arith.constant 8 : i32
    %c0_i32 = arith.constant 0 : i32
    %3 = arith.cmpi eq, %c8_i32, %c0_i32 : i32
    %c1_i32 = arith.constant 1 : i32
    %4 = arith.select %3, %c1_i32, %c8_i32 : i32
    %5 = vector.broadcast %4 : i32 to vector<16x1xi32>
    %6 = arith.remsi %2, %5 : vector<16x1xi32>
    %c0_i32_3 = arith.constant 0 : i32
    %7 = vector.broadcast %c0_i32_3 : i32 to vector<16x1xi32>
    %8 = arith.cmpi ne, %6, %7 : vector<16x1xi32>
    %c0_i32_4 = arith.constant 0 : i32
    %9 = vector.broadcast %c0_i32_4 : i32 to vector<16x1xi32>
    %10 = arith.cmpi slt, %6, %9 : vector<16x1xi32>
    %c0_i32_5 = arith.constant 0 : i32
    %11 = arith.cmpi slt, %4, %c0_i32_5 : i32
    %12 = vector.broadcast %11 : i1 to vector<16x1xi1>
    %13 = vector.broadcast %12 : vector<16x1xi1> to vector<16x1xi1>
    %14 = arith.xori %10, %13 : vector<16x1xi1>
    %15 = arith.andi %14, %8 : vector<16x1xi1>
    %16 = vector.broadcast %4 : i32 to vector<16x1xi32>
    %17 = arith.addi %6, %16 : vector<16x1xi32>
    %18 = arith.select %15, %17, %6 : vector<16x1xi1>, vector<16x1xi32>
    %c0_6 = arith.constant 0 : index
    %c0_7 = arith.constant 0 : index
    %c0_8 = arith.constant 0 : index
    %19 = vector.load %arg5[%c0_6, %c0_7, %c0_8] : memref<2x6x32xf32, #tpu.memory_space<vmem>>, vector<1x6x32xf32>
    %20 = vector.shape_cast %19 : vector<1x6x32xf32> to vector<6x32xf32>
    %21 = vector.extract_strided_slice %20 {offsets = [0, 0], sizes = [1, 32], strides = [1, 1]} : vector<6x32xf32> to vector<1x32xf32>
    %22 = vector.extract_strided_slice %20 {offsets = [1, 0], sizes = [1, 32], strides = [1, 1]} : vector<6x32xf32> to vector<1x32xf32>
    %23 = vector.extract_strided_slice %20 {offsets = [2, 0], sizes = [1, 32], strides = [1, 1]} : vector<6x32xf32> to vector<1x32xf32>
    %24 = vector.extract_strided_slice %20 {offsets = [3, 0], sizes = [1, 32], strides = [1, 1]} : vector<6x32xf32> to vector<1x32xf32>
    %25 = vector.extract_strided_slice %20 {offsets = [4, 0], sizes = [1, 32], strides = [1, 1]} : vector<6x32xf32> to vector<1x32xf32>
    %26 = vector.extract_strided_slice %20 {offsets = [5, 0], sizes = [1, 32], strides = [1, 1]} : vector<6x32xf32> to vector<1x32xf32>
    %c0_9 = arith.constant 0 : index
    %c0_10 = arith.constant 0 : index
    %c0_11 = arith.constant 0 : index
    %27 = vector.load %arg7[%c0_9, %c0_10, %c0_11] : memref<2x1x64xf32, #tpu.memory_space<vmem>>, vector<1x1x64xf32>
    %28 = vector.shape_cast %27 : vector<1x1x64xf32> to vector<1x64xf32>
    %29 = arith.truncf %0 : vector<16x32xf32> to vector<16x32xbf16>
    %c0_12 = arith.constant 0 : index
    %c0_13 = arith.constant 0 : index
    %c0_14 = arith.constant 0 : index
    %30 = vector.load %arg2[%c0_12, %c0_13, %c0_14] : memref<2x32x128xbf16, #tpu.memory_space<vmem>>, vector<1x32x128xbf16>
    %31 = vector.shape_cast %30 : vector<1x32x128xbf16> to vector<32x128xbf16>
    %cst = arith.constant dense<0.000000e+00> : vector<16x128xf32>
    %32 = tpu.matmul %29, %31, %cst {dimension_numbers = #tpu.dot_dimension_numbers<[1], [0], [0], [1], [0, 0, 1, 1], [], []>} : vector<16x32xbf16>, vector<32x128xbf16>, vector<16x128xf32> -> vector<16x128xf32>
    %c0_15 = arith.constant 0 : index
    %c0_16 = arith.constant 0 : index
    %c0_17 = arith.constant 0 : index
    %33 = vector.load %arg3[%c0_15, %c0_16, %c0_17] : memref<2x1x128xf32, #tpu.memory_space<vmem>>, vector<1x1x128xf32>
    %34 = vector.shape_cast %33 : vector<1x1x128xf32> to vector<1x128xf32>
    %35 = vector.broadcast %34 : vector<1x128xf32> to vector<16x128xf32>
    %36 = arith.addf %32, %35 : vector<16x128xf32>
    %37 = vector.extract_strided_slice %36 {offsets = [0, 0], sizes = [16, 16], strides = [1, 1]} : vector<16x128xf32> to vector<16x16xf32>
    %38 = arith.truncf %37 : vector<16x16xf32> to vector<16x16xbf16>
    %39 = vector.extract_strided_slice %36 {offsets = [0, 32], sizes = [16, 16], strides = [1, 1]} : vector<16x128xf32> to vector<16x16xf32>
    %40 = arith.truncf %39 : vector<16x16xf32> to vector<16x16xbf16>
    %41 = vector.extract_strided_slice %36 {offsets = [0, 64], sizes = [16, 16], strides = [1, 1]} : vector<16x128xf32> to vector<16x16xf32>
    %42 = arith.truncf %41 : vector<16x16xf32> to vector<16x16xbf16>
    %cst_18 = arith.constant dense<0.000000e+00> : vector<16x16xf32>
    %43 = tpu.matmul %38, %40, %cst_18 {dimension_numbers = #tpu.dot_dimension_numbers<[1], [1], [0], [0], [0, 0, 1, 0], [], []>} : vector<16x16xbf16>, vector<16x16xbf16>, vector<16x16xf32> -> vector<16x16xf32>
    %44 = arith.addf %43, %1 : vector<16x16xf32>
    %cst_19 = arith.constant dense<0xFF800000> : vector<16xf32>
    %45 = vector.multi_reduction <maximumf>, %44, %cst_19 [1] : vector<16x16xf32> to vector<16xf32>
    %46 = vector.shape_cast %45 : vector<16xf32> to vector<16x1xf32>
    %47 = vector.broadcast %46 : vector<16x1xf32> to vector<16x16xf32>
    %48 = arith.subf %44, %47 : vector<16x16xf32>
    %49 = math.exp %48 : vector<16x16xf32>
    %cst_20 = arith.constant dense<0.000000e+00> : vector<16xf32>
    %50 = vector.multi_reduction <add>, %49, %cst_20 [1] : vector<16x16xf32> to vector<16xf32>
    %51 = vector.shape_cast %50 : vector<16xf32> to vector<16x1xf32>
    %52 = tpu.reciprocal %51 {approx = true} : vector<16x1xf32> -> vector<16x1xf32>
    %53 = vector.broadcast %52 : vector<16x1xf32> to vector<16x16xf32>
    %54 = arith.mulf %49, %53 : vector<16x16xf32>
    %55 = arith.truncf %54 : vector<16x16xf32> to vector<16x16xbf16>
    %cst_21 = arith.constant dense<0.000000e+00> : vector<16x16xf32>
    %56 = tpu.matmul %55, %42, %cst_21 {dimension_numbers = #tpu.dot_dimension_numbers<[1], [0], [0], [1], [0, 0, 1, 1], [], []>} : vector<16x16xbf16>, vector<16x16xbf16>, vector<16x16xf32> -> vector<16x16xf32>
    %57 = vector.extract_strided_slice %36 {offsets = [0, 16], sizes = [16, 16], strides = [1, 1]} : vector<16x128xf32> to vector<16x16xf32>
    %58 = arith.truncf %57 : vector<16x16xf32> to vector<16x16xbf16>
    %59 = vector.extract_strided_slice %36 {offsets = [0, 48], sizes = [16, 16], strides = [1, 1]} : vector<16x128xf32> to vector<16x16xf32>
    %60 = arith.truncf %59 : vector<16x16xf32> to vector<16x16xbf16>
    %61 = vector.extract_strided_slice %36 {offsets = [0, 80], sizes = [16, 16], strides = [1, 1]} : vector<16x128xf32> to vector<16x16xf32>
    %62 = arith.truncf %61 : vector<16x16xf32> to vector<16x16xbf16>
    %cst_22 = arith.constant dense<0.000000e+00> : vector<16x16xf32>
    %63 = tpu.matmul %58, %60, %cst_22 {dimension_numbers = #tpu.dot_dimension_numbers<[1], [1], [0], [0], [0, 0, 1, 0], [], []>} : vector<16x16xbf16>, vector<16x16xbf16>, vector<16x16xf32> -> vector<16x16xf32>
    %64 = arith.addf %63, %1 : vector<16x16xf32>
    %cst_23 = arith.constant dense<0xFF800000> : vector<16xf32>
    %65 = vector.multi_reduction <maximumf>, %64, %cst_23 [1] : vector<16x16xf32> to vector<16xf32>
    %66 = vector.shape_cast %65 : vector<16xf32> to vector<16x1xf32>
    %67 = vector.broadcast %66 : vector<16x1xf32> to vector<16x16xf32>
    %68 = arith.subf %64, %67 : vector<16x16xf32>
    %69 = math.exp %68 : vector<16x16xf32>
    %cst_24 = arith.constant dense<0.000000e+00> : vector<16xf32>
    %70 = vector.multi_reduction <add>, %69, %cst_24 [1] : vector<16x16xf32> to vector<16xf32>
    %71 = vector.shape_cast %70 : vector<16xf32> to vector<16x1xf32>
    %72 = tpu.reciprocal %71 {approx = true} : vector<16x1xf32> -> vector<16x1xf32>
    %73 = vector.broadcast %72 : vector<16x1xf32> to vector<16x16xf32>
    %74 = arith.mulf %69, %73 : vector<16x16xf32>
    %75 = arith.truncf %74 : vector<16x16xf32> to vector<16x16xbf16>
    %cst_25 = arith.constant dense<0.000000e+00> : vector<16x16xf32>
    %76 = tpu.matmul %75, %62, %cst_25 {dimension_numbers = #tpu.dot_dimension_numbers<[1], [0], [0], [1], [0, 0, 1, 1], [], []>} : vector<16x16xbf16>, vector<16x16xbf16>, vector<16x16xf32> -> vector<16x16xf32>
    %77 = tpu.concatenate %56, %76 in 1 : vector<16x16xf32>, vector<16x16xf32> -> vector<16x32xf32>
    %78 = arith.truncf %77 : vector<16x32xf32> to vector<16x32xbf16>
    %c0_26 = arith.constant 0 : index
    %c0_27 = arith.constant 0 : index
    %c0_28 = arith.constant 0 : index
    %79 = vector.load %arg4[%c0_26, %c0_27, %c0_28] : memref<2x32x32xbf16, #tpu.memory_space<vmem>>, vector<1x32x32xbf16>
    %80 = vector.shape_cast %79 : vector<1x32x32xbf16> to vector<32x32xbf16>
    %cst_29 = arith.constant dense<0.000000e+00> : vector<16x32xf32>
    %81 = tpu.matmul %78, %80, %cst_29 {dimension_numbers = #tpu.dot_dimension_numbers<[1], [0], [0], [1], [0, 0, 1, 1], [], []>} : vector<16x32xbf16>, vector<32x32xbf16>, vector<16x32xf32> -> vector<16x32xf32>
    %82 = vector.broadcast %21 : vector<1x32xf32> to vector<16x32xf32>
    %83 = arith.addf %81, %82 : vector<16x32xf32>
    %84 = arith.addf %83, %0 : vector<16x32xf32>
    %cst_30 = arith.constant dense<0.000000e+00> : vector<16xf32>
    %85 = vector.multi_reduction <add>, %84, %cst_30 [1] : vector<16x32xf32> to vector<16xf32>
    %86 = vector.shape_cast %85 : vector<16xf32> to vector<16x1xf32>
    %cst_31 = arith.constant 3.200000e+01 : f32
    %87 = vector.broadcast %cst_31 : f32 to vector<16x1xf32>
    %88 = arith.divf %86, %87 : vector<16x1xf32>
    %89 = vector.broadcast %88 : vector<16x1xf32> to vector<16x32xf32>
    %90 = arith.subf %84, %89 : vector<16x32xf32>
    %91 = arith.mulf %90, %90 : vector<16x32xf32>
    %cst_32 = arith.constant dense<0.000000e+00> : vector<16xf32>
    %92 = vector.multi_reduction <add>, %91, %cst_32 [1] : vector<16x32xf32> to vector<16xf32>
    %93 = vector.shape_cast %92 : vector<16xf32> to vector<16x1xf32>
    %cst_33 = arith.constant 3.200000e+01 : f32
    %94 = vector.broadcast %cst_33 : f32 to vector<16x1xf32>
    %95 = arith.divf %93, %94 : vector<16x1xf32>
    %96 = vector.broadcast %88 : vector<16x1xf32> to vector<16x32xf32>
    %97 = arith.subf %84, %96 : vector<16x32xf32>
    %cst_34 = arith.constant 9.99999974E-6 : f32
    %98 = vector.broadcast %cst_34 : f32 to vector<16x1xf32>
    %99 = arith.addf %95, %98 : vector<16x1xf32>
    %100 = math.rsqrt %99 : vector<16x1xf32>
    %101 = vector.broadcast %100 : vector<16x1xf32> to vector<16x32xf32>
    %102 = arith.mulf %97, %101 : vector<16x32xf32>
    %103 = vector.broadcast %22 : vector<1x32xf32> to vector<16x32xf32>
    %104 = arith.mulf %102, %103 : vector<16x32xf32>
    %105 = vector.broadcast %23 : vector<1x32xf32> to vector<16x32xf32>
    %106 = arith.addf %104, %105 : vector<16x32xf32>
    %c1_i32_35 = arith.constant 1 : i32
    %107 = tpu.dynamic_rotate %106 by %c1_i32_35 dim 0 : vector<16x32xf32>, i32 -> vector<16x32xf32>
    %c-1_i32 = arith.constant -1 : i32
    %108 = vector.broadcast %c-1_i32 : i32 to vector<16x1xi32>
    %109 = arith.addi %18, %108 : vector<16x1xi32>
    %c0_i32_36 = arith.constant 0 : i32
    %110 = vector.broadcast %c0_i32_36 : i32 to vector<16x1xi32>
    %111 = arith.cmpi sge, %109, %110 : vector<16x1xi32>
    %c-1_i32_37 = arith.constant -1 : i32
    %112 = vector.broadcast %c-1_i32_37 : i32 to vector<16x1xi32>
    %113 = arith.addi %18, %112 : vector<16x1xi32>
    %c8_i32_38 = arith.constant 8 : i32
    %114 = vector.broadcast %c8_i32_38 : i32 to vector<16x1xi32>
    %115 = arith.cmpi slt, %113, %114 : vector<16x1xi32>
    %116 = arith.andi %111, %115 : vector<16x1xi1>
    %cst_39 = arith.constant 0.000000e+00 : f32
    %117 = vector.shape_cast %116 : vector<16x1xi1> to vector<16x1xi1>
    %118 = vector.broadcast %117 : vector<16x1xi1> to vector<16x32xi1>
    %119 = vector.broadcast %cst_39 : f32 to vector<16x32xf32>
    %120 = arith.select %118, %107, %119 : vector<16x32xi1>, vector<16x32xf32>
    %c15_i32 = arith.constant 15 : i32
    %121 = tpu.dynamic_rotate %106 by %c15_i32 dim 0 : vector<16x32xf32>, i32 -> vector<16x32xf32>
    %c1_i32_40 = arith.constant 1 : i32
    %122 = vector.broadcast %c1_i32_40 : i32 to vector<16x1xi32>
    %123 = arith.addi %18, %122 : vector<16x1xi32>
    %c0_i32_41 = arith.constant 0 : i32
    %124 = vector.broadcast %c0_i32_41 : i32 to vector<16x1xi32>
    %125 = arith.cmpi sge, %123, %124 : vector<16x1xi32>
    %c1_i32_42 = arith.constant 1 : i32
    %126 = vector.broadcast %c1_i32_42 : i32 to vector<16x1xi32>
    %127 = arith.addi %18, %126 : vector<16x1xi32>
    %c8_i32_43 = arith.constant 8 : i32
    %128 = vector.broadcast %c8_i32_43 : i32 to vector<16x1xi32>
    %129 = arith.cmpi slt, %127, %128 : vector<16x1xi32>
    %130 = arith.andi %125, %129 : vector<16x1xi1>
    %cst_44 = arith.constant 0.000000e+00 : f32
    %131 = vector.shape_cast %130 : vector<16x1xi1> to vector<16x1xi1>
    %132 = vector.broadcast %131 : vector<16x1xi1> to vector<16x32xi1>
    %133 = vector.broadcast %cst_44 : f32 to vector<16x32xf32>
    %134 = arith.select %132, %121, %133 : vector<16x32xi1>, vector<16x32xf32>
    %135 = tpu.concatenate %120, %106, %134 in 1 : vector<16x32xf32>, vector<16x32xf32>, vector<16x32xf32> -> vector<16x96xf32>
    %136 = arith.truncf %135 : vector<16x96xf32> to vector<16x96xbf16>
    %c0_45 = arith.constant 0 : index
    %c0_46 = arith.constant 0 : index
    %c0_47 = arith.constant 0 : index
    %137 = vector.load %arg6[%c0_45, %c0_46, %c0_47] : memref<2x96x64xbf16, #tpu.memory_space<vmem>>, vector<1x96x64xbf16>
    %138 = vector.shape_cast %137 : vector<1x96x64xbf16> to vector<96x64xbf16>
    %cst_48 = arith.constant dense<0.000000e+00> : vector<16x64xf32>
    %139 = tpu.matmul %136, %138, %cst_48 {dimension_numbers = #tpu.dot_dimension_numbers<[1], [0], [0], [1], [0, 0, 1, 1], [], []>} : vector<16x96xbf16>, vector<96x64xbf16>, vector<16x64xf32> -> vector<16x64xf32>
    %140 = vector.broadcast %28 : vector<1x64xf32> to vector<16x64xf32>
    %141 = arith.addf %139, %140 : vector<16x64xf32>
    %cst_49 = arith.constant 0.000000e+00 : f32
    %142 = vector.broadcast %cst_49 : f32 to vector<16x64xf32>
    %143 = arith.maximumf %141, %142 : vector<16x64xf32>
    %144 = arith.truncf %143 : vector<16x64xf32> to vector<16x64xbf16>
    %c0_50 = arith.constant 0 : index
    %c0_51 = arith.constant 0 : index
    %c0_52 = arith.constant 0 : index
    %145 = vector.load %arg8[%c0_50, %c0_51, %c0_52] : memref<2x64x32xbf16, #tpu.memory_space<vmem>>, vector<1x64x32xbf16>
    %146 = vector.shape_cast %145 : vector<1x64x32xbf16> to vector<64x32xbf16>
    %cst_53 = arith.constant dense<0.000000e+00> : vector<16x32xf32>
    %147 = tpu.matmul %144, %146, %cst_53 {dimension_numbers = #tpu.dot_dimension_numbers<[1], [0], [0], [1], [0, 0, 1, 1], [], []>} : vector<16x64xbf16>, vector<64x32xbf16>, vector<16x32xf32> -> vector<16x32xf32>
    %148 = vector.broadcast %26 : vector<1x32xf32> to vector<16x32xf32>
    %149 = arith.addf %147, %148 : vector<16x32xf32>
    %150 = arith.addf %149, %106 : vector<16x32xf32>
    %cst_54 = arith.constant dense<0.000000e+00> : vector<16xf32>
    %151 = vector.multi_reduction <add>, %150, %cst_54 [1] : vector<16x32xf32> to vector<16xf32>
    %152 = vector.shape_cast %151 : vector<16xf32> to vector<16x1xf32>
    %cst_55 = arith.constant 3.200000e+01 : f32
    %153 = vector.broadcast %cst_55 : f32 to vector<16x1xf32>
    %154 = arith.divf %152, %153 : vector<16x1xf32>
    %155 = vector.broadcast %154 : vector<16x1xf32> to vector<16x32xf32>
    %156 = arith.subf %150, %155 : vector<16x32xf32>
    %157 = arith.mulf %156, %156 : vector<16x32xf32>
    %cst_56 = arith.constant dense<0.000000e+00> : vector<16xf32>
    %158 = vector.multi_reduction <add>, %157, %cst_56 [1] : vector<16x32xf32> to vector<16xf32>
    %159 = vector.shape_cast %158 : vector<16xf32> to vector<16x1xf32>
    %cst_57 = arith.constant 3.200000e+01 : f32
    %160 = vector.broadcast %cst_57 : f32 to vector<16x1xf32>
    %161 = arith.divf %159, %160 : vector<16x1xf32>
    %162 = vector.broadcast %154 : vector<16x1xf32> to vector<16x32xf32>
    %163 = arith.subf %150, %162 : vector<16x32xf32>
    %cst_58 = arith.constant 9.99999974E-6 : f32
    %164 = vector.broadcast %cst_58 : f32 to vector<16x1xf32>
    %165 = arith.addf %161, %164 : vector<16x1xf32>
    %166 = math.rsqrt %165 : vector<16x1xf32>
    %167 = vector.broadcast %166 : vector<16x1xf32> to vector<16x32xf32>
    %168 = arith.mulf %163, %167 : vector<16x32xf32>
    %169 = vector.broadcast %24 : vector<1x32xf32> to vector<16x32xf32>
    %170 = arith.mulf %168, %169 : vector<16x32xf32>
    %171 = vector.broadcast %25 : vector<1x32xf32> to vector<16x32xf32>
    %172 = arith.addf %170, %171 : vector<16x32xf32>
    %c1 = arith.constant 1 : index
    %c0_59 = arith.constant 0 : index
    %c0_60 = arith.constant 0 : index
    %173 = vector.load %arg5[%c1, %c0_59, %c0_60] : memref<2x6x32xf32, #tpu.memory_space<vmem>>, vector<1x6x32xf32>
    %174 = vector.shape_cast %173 : vector<1x6x32xf32> to vector<6x32xf32>
    %175 = vector.extract_strided_slice %174 {offsets = [0, 0], sizes = [1, 32], strides = [1, 1]} : vector<6x32xf32> to vector<1x32xf32>
    %176 = vector.extract_strided_slice %174 {offsets = [1, 0], sizes = [1, 32], strides = [1, 1]} : vector<6x32xf32> to vector<1x32xf32>
    %177 = vector.extract_strided_slice %174 {offsets = [2, 0], sizes = [1, 32], strides = [1, 1]} : vector<6x32xf32> to vector<1x32xf32>
    %178 = vector.extract_strided_slice %174 {offsets = [3, 0], sizes = [1, 32], strides = [1, 1]} : vector<6x32xf32> to vector<1x32xf32>
    %179 = vector.extract_strided_slice %174 {offsets = [4, 0], sizes = [1, 32], strides = [1, 1]} : vector<6x32xf32> to vector<1x32xf32>
    %180 = vector.extract_strided_slice %174 {offsets = [5, 0], sizes = [1, 32], strides = [1, 1]} : vector<6x32xf32> to vector<1x32xf32>
    %c1_61 = arith.constant 1 : index
    %c0_62 = arith.constant 0 : index
    %c0_63 = arith.constant 0 : index
    %181 = vector.load %arg7[%c1_61, %c0_62, %c0_63] : memref<2x1x64xf32, #tpu.memory_space<vmem>>, vector<1x1x64xf32>
    %182 = vector.shape_cast %181 : vector<1x1x64xf32> to vector<1x64xf32>
    %183 = arith.truncf %172 : vector<16x32xf32> to vector<16x32xbf16>
    %c1_64 = arith.constant 1 : index
    %c0_65 = arith.constant 0 : index
    %c0_66 = arith.constant 0 : index
    %184 = vector.load %arg2[%c1_64, %c0_65, %c0_66] : memref<2x32x128xbf16, #tpu.memory_space<vmem>>, vector<1x32x128xbf16>
    %185 = vector.shape_cast %184 : vector<1x32x128xbf16> to vector<32x128xbf16>
    %cst_67 = arith.constant dense<0.000000e+00> : vector<16x128xf32>
    %186 = tpu.matmul %183, %185, %cst_67 {dimension_numbers = #tpu.dot_dimension_numbers<[1], [0], [0], [1], [0, 0, 1, 1], [], []>} : vector<16x32xbf16>, vector<32x128xbf16>, vector<16x128xf32> -> vector<16x128xf32>
    %c1_68 = arith.constant 1 : index
    %c0_69 = arith.constant 0 : index
    %c0_70 = arith.constant 0 : index
    %187 = vector.load %arg3[%c1_68, %c0_69, %c0_70] : memref<2x1x128xf32, #tpu.memory_space<vmem>>, vector<1x1x128xf32>
    %188 = vector.shape_cast %187 : vector<1x1x128xf32> to vector<1x128xf32>
    %189 = vector.broadcast %188 : vector<1x128xf32> to vector<16x128xf32>
    %190 = arith.addf %186, %189 : vector<16x128xf32>
    %191 = vector.extract_strided_slice %190 {offsets = [0, 0], sizes = [16, 16], strides = [1, 1]} : vector<16x128xf32> to vector<16x16xf32>
    %192 = arith.truncf %191 : vector<16x16xf32> to vector<16x16xbf16>
    %193 = vector.extract_strided_slice %190 {offsets = [0, 32], sizes = [16, 16], strides = [1, 1]} : vector<16x128xf32> to vector<16x16xf32>
    %194 = arith.truncf %193 : vector<16x16xf32> to vector<16x16xbf16>
    %195 = vector.extract_strided_slice %190 {offsets = [0, 64], sizes = [16, 16], strides = [1, 1]} : vector<16x128xf32> to vector<16x16xf32>
    %196 = arith.truncf %195 : vector<16x16xf32> to vector<16x16xbf16>
    %cst_71 = arith.constant dense<0.000000e+00> : vector<16x16xf32>
    %197 = tpu.matmul %192, %194, %cst_71 {dimension_numbers = #tpu.dot_dimension_numbers<[1], [1], [0], [0], [0, 0, 1, 0], [], []>} : vector<16x16xbf16>, vector<16x16xbf16>, vector<16x16xf32> -> vector<16x16xf32>
    %198 = arith.addf %197, %1 : vector<16x16xf32>
    %cst_72 = arith.constant dense<0xFF800000> : vector<16xf32>
    %199 = vector.multi_reduction <maximumf>, %198, %cst_72 [1] : vector<16x16xf32> to vector<16xf32>
    %200 = vector.shape_cast %199 : vector<16xf32> to vector<16x1xf32>
    %201 = vector.broadcast %200 : vector<16x1xf32> to vector<16x16xf32>
    %202 = arith.subf %198, %201 : vector<16x16xf32>
    %203 = math.exp %202 : vector<16x16xf32>
    %cst_73 = arith.constant dense<0.000000e+00> : vector<16xf32>
    %204 = vector.multi_reduction <add>, %203, %cst_73 [1] : vector<16x16xf32> to vector<16xf32>
    %205 = vector.shape_cast %204 : vector<16xf32> to vector<16x1xf32>
    %206 = tpu.reciprocal %205 {approx = true} : vector<16x1xf32> -> vector<16x1xf32>
    %207 = vector.broadcast %206 : vector<16x1xf32> to vector<16x16xf32>
    %208 = arith.mulf %203, %207 : vector<16x16xf32>
    %209 = arith.truncf %208 : vector<16x16xf32> to vector<16x16xbf16>
    %cst_74 = arith.constant dense<0.000000e+00> : vector<16x16xf32>
    %210 = tpu.matmul %209, %196, %cst_74 {dimension_numbers = #tpu.dot_dimension_numbers<[1], [0], [0], [1], [0, 0, 1, 1], [], []>} : vector<16x16xbf16>, vector<16x16xbf16>, vector<16x16xf32> -> vector<16x16xf32>
    %211 = vector.extract_strided_slice %190 {offsets = [0, 16], sizes = [16, 16], strides = [1, 1]} : vector<16x128xf32> to vector<16x16xf32>
    %212 = arith.truncf %211 : vector<16x16xf32> to vector<16x16xbf16>
    %213 = vector.extract_strided_slice %190 {offsets = [0, 48], sizes = [16, 16], strides = [1, 1]} : vector<16x128xf32> to vector<16x16xf32>
    %214 = arith.truncf %213 : vector<16x16xf32> to vector<16x16xbf16>
    %215 = vector.extract_strided_slice %190 {offsets = [0, 80], sizes = [16, 16], strides = [1, 1]} : vector<16x128xf32> to vector<16x16xf32>
    %216 = arith.truncf %215 : vector<16x16xf32> to vector<16x16xbf16>
    %cst_75 = arith.constant dense<0.000000e+00> : vector<16x16xf32>
    %217 = tpu.matmul %212, %214, %cst_75 {dimension_numbers = #tpu.dot_dimension_numbers<[1], [1], [0], [0], [0, 0, 1, 0], [], []>} : vector<16x16xbf16>, vector<16x16xbf16>, vector<16x16xf32> -> vector<16x16xf32>
    %218 = arith.addf %217, %1 : vector<16x16xf32>
    %cst_76 = arith.constant dense<0xFF800000> : vector<16xf32>
    %219 = vector.multi_reduction <maximumf>, %218, %cst_76 [1] : vector<16x16xf32> to vector<16xf32>
    %220 = vector.shape_cast %219 : vector<16xf32> to vector<16x1xf32>
    %221 = vector.broadcast %220 : vector<16x1xf32> to vector<16x16xf32>
    %222 = arith.subf %218, %221 : vector<16x16xf32>
    %223 = math.exp %222 : vector<16x16xf32>
    %cst_77 = arith.constant dense<0.000000e+00> : vector<16xf32>
    %224 = vector.multi_reduction <add>, %223, %cst_77 [1] : vector<16x16xf32> to vector<16xf32>
    %225 = vector.shape_cast %224 : vector<16xf32> to vector<16x1xf32>
    %226 = tpu.reciprocal %225 {approx = true} : vector<16x1xf32> -> vector<16x1xf32>
    %227 = vector.broadcast %226 : vector<16x1xf32> to vector<16x16xf32>
    %228 = arith.mulf %223, %227 : vector<16x16xf32>
    %229 = arith.truncf %228 : vector<16x16xf32> to vector<16x16xbf16>
    %cst_78 = arith.constant dense<0.000000e+00> : vector<16x16xf32>
    %230 = tpu.matmul %229, %216, %cst_78 {dimension_numbers = #tpu.dot_dimension_numbers<[1], [0], [0], [1], [0, 0, 1, 1], [], []>} : vector<16x16xbf16>, vector<16x16xbf16>, vector<16x16xf32> -> vector<16x16xf32>
    %231 = tpu.concatenate %210, %230 in 1 : vector<16x16xf32>, vector<16x16xf32> -> vector<16x32xf32>
    %232 = arith.truncf %231 : vector<16x32xf32> to vector<16x32xbf16>
    %c1_79 = arith.constant 1 : index
    %c0_80 = arith.constant 0 : index
    %c0_81 = arith.constant 0 : index
    %233 = vector.load %arg4[%c1_79, %c0_80, %c0_81] : memref<2x32x32xbf16, #tpu.memory_space<vmem>>, vector<1x32x32xbf16>
    %234 = vector.shape_cast %233 : vector<1x32x32xbf16> to vector<32x32xbf16>
    %cst_82 = arith.constant dense<0.000000e+00> : vector<16x32xf32>
    %235 = tpu.matmul %232, %234, %cst_82 {dimension_numbers = #tpu.dot_dimension_numbers<[1], [0], [0], [1], [0, 0, 1, 1], [], []>} : vector<16x32xbf16>, vector<32x32xbf16>, vector<16x32xf32> -> vector<16x32xf32>
    %236 = vector.broadcast %175 : vector<1x32xf32> to vector<16x32xf32>
    %237 = arith.addf %235, %236 : vector<16x32xf32>
    %238 = arith.addf %237, %172 : vector<16x32xf32>
    %cst_83 = arith.constant dense<0.000000e+00> : vector<16xf32>
    %239 = vector.multi_reduction <add>, %238, %cst_83 [1] : vector<16x32xf32> to vector<16xf32>
    %240 = vector.shape_cast %239 : vector<16xf32> to vector<16x1xf32>
    %cst_84 = arith.constant 3.200000e+01 : f32
    %241 = vector.broadcast %cst_84 : f32 to vector<16x1xf32>
    %242 = arith.divf %240, %241 : vector<16x1xf32>
    %243 = vector.broadcast %242 : vector<16x1xf32> to vector<16x32xf32>
    %244 = arith.subf %238, %243 : vector<16x32xf32>
    %245 = arith.mulf %244, %244 : vector<16x32xf32>
    %cst_85 = arith.constant dense<0.000000e+00> : vector<16xf32>
    %246 = vector.multi_reduction <add>, %245, %cst_85 [1] : vector<16x32xf32> to vector<16xf32>
    %247 = vector.shape_cast %246 : vector<16xf32> to vector<16x1xf32>
    %cst_86 = arith.constant 3.200000e+01 : f32
    %248 = vector.broadcast %cst_86 : f32 to vector<16x1xf32>
    %249 = arith.divf %247, %248 : vector<16x1xf32>
    %250 = vector.broadcast %242 : vector<16x1xf32> to vector<16x32xf32>
    %251 = arith.subf %238, %250 : vector<16x32xf32>
    %cst_87 = arith.constant 9.99999974E-6 : f32
    %252 = vector.broadcast %cst_87 : f32 to vector<16x1xf32>
    %253 = arith.addf %249, %252 : vector<16x1xf32>
    %254 = math.rsqrt %253 : vector<16x1xf32>
    %255 = vector.broadcast %254 : vector<16x1xf32> to vector<16x32xf32>
    %256 = arith.mulf %251, %255 : vector<16x32xf32>
    %257 = vector.broadcast %176 : vector<1x32xf32> to vector<16x32xf32>
    %258 = arith.mulf %256, %257 : vector<16x32xf32>
    %259 = vector.broadcast %177 : vector<1x32xf32> to vector<16x32xf32>
    %260 = arith.addf %258, %259 : vector<16x32xf32>
    %c1_i32_88 = arith.constant 1 : i32
    %261 = tpu.dynamic_rotate %260 by %c1_i32_88 dim 0 : vector<16x32xf32>, i32 -> vector<16x32xf32>
    %c-1_i32_89 = arith.constant -1 : i32
    %262 = vector.broadcast %c-1_i32_89 : i32 to vector<16x1xi32>
    %263 = arith.addi %18, %262 : vector<16x1xi32>
    %c0_i32_90 = arith.constant 0 : i32
    %264 = vector.broadcast %c0_i32_90 : i32 to vector<16x1xi32>
    %265 = arith.cmpi sge, %263, %264 : vector<16x1xi32>
    %c-1_i32_91 = arith.constant -1 : i32
    %266 = vector.broadcast %c-1_i32_91 : i32 to vector<16x1xi32>
    %267 = arith.addi %18, %266 : vector<16x1xi32>
    %c8_i32_92 = arith.constant 8 : i32
    %268 = vector.broadcast %c8_i32_92 : i32 to vector<16x1xi32>
    %269 = arith.cmpi slt, %267, %268 : vector<16x1xi32>
    %270 = arith.andi %265, %269 : vector<16x1xi1>
    %cst_93 = arith.constant 0.000000e+00 : f32
    %271 = vector.shape_cast %270 : vector<16x1xi1> to vector<16x1xi1>
    %272 = vector.broadcast %271 : vector<16x1xi1> to vector<16x32xi1>
    %273 = vector.broadcast %cst_93 : f32 to vector<16x32xf32>
    %274 = arith.select %272, %261, %273 : vector<16x32xi1>, vector<16x32xf32>
    %c15_i32_94 = arith.constant 15 : i32
    %275 = tpu.dynamic_rotate %260 by %c15_i32_94 dim 0 : vector<16x32xf32>, i32 -> vector<16x32xf32>
    %c1_i32_95 = arith.constant 1 : i32
    %276 = vector.broadcast %c1_i32_95 : i32 to vector<16x1xi32>
    %277 = arith.addi %18, %276 : vector<16x1xi32>
    %c0_i32_96 = arith.constant 0 : i32
    %278 = vector.broadcast %c0_i32_96 : i32 to vector<16x1xi32>
    %279 = arith.cmpi sge, %277, %278 : vector<16x1xi32>
    %c1_i32_97 = arith.constant 1 : i32
    %280 = vector.broadcast %c1_i32_97 : i32 to vector<16x1xi32>
    %281 = arith.addi %18, %280 : vector<16x1xi32>
    %c8_i32_98 = arith.constant 8 : i32
    %282 = vector.broadcast %c8_i32_98 : i32 to vector<16x1xi32>
    %283 = arith.cmpi slt, %281, %282 : vector<16x1xi32>
    %284 = arith.andi %279, %283 : vector<16x1xi1>
    %cst_99 = arith.constant 0.000000e+00 : f32
    %285 = vector.shape_cast %284 : vector<16x1xi1> to vector<16x1xi1>
    %286 = vector.broadcast %285 : vector<16x1xi1> to vector<16x32xi1>
    %287 = vector.broadcast %cst_99 : f32 to vector<16x32xf32>
    %288 = arith.select %286, %275, %287 : vector<16x32xi1>, vector<16x32xf32>
    %289 = tpu.concatenate %274, %260, %288 in 1 : vector<16x32xf32>, vector<16x32xf32>, vector<16x32xf32> -> vector<16x96xf32>
    %290 = arith.truncf %289 : vector<16x96xf32> to vector<16x96xbf16>
    %c1_100 = arith.constant 1 : index
    %c0_101 = arith.constant 0 : index
    %c0_102 = arith.constant 0 : index
    %291 = vector.load %arg6[%c1_100, %c0_101, %c0_102] : memref<2x96x64xbf16, #tpu.memory_space<vmem>>, vector<1x96x64xbf16>
    %292 = vector.shape_cast %291 : vector<1x96x64xbf16> to vector<96x64xbf16>
    %cst_103 = arith.constant dense<0.000000e+00> : vector<16x64xf32>
    %293 = tpu.matmul %290, %292, %cst_103 {dimension_numbers = #tpu.dot_dimension_numbers<[1], [0], [0], [1], [0, 0, 1, 1], [], []>} : vector<16x96xbf16>, vector<96x64xbf16>, vector<16x64xf32> -> vector<16x64xf32>
    %294 = vector.broadcast %182 : vector<1x64xf32> to vector<16x64xf32>
    %295 = arith.addf %293, %294 : vector<16x64xf32>
    %cst_104 = arith.constant 0.000000e+00 : f32
    %296 = vector.broadcast %cst_104 : f32 to vector<16x64xf32>
    %297 = arith.maximumf %295, %296 : vector<16x64xf32>
    %298 = arith.truncf %297 : vector<16x64xf32> to vector<16x64xbf16>
    %c1_105 = arith.constant 1 : index
    %c0_106 = arith.constant 0 : index
    %c0_107 = arith.constant 0 : index
    %299 = vector.load %arg8[%c1_105, %c0_106, %c0_107] : memref<2x64x32xbf16, #tpu.memory_space<vmem>>, vector<1x64x32xbf16>
    %300 = vector.shape_cast %299 : vector<1x64x32xbf16> to vector<64x32xbf16>
    %cst_108 = arith.constant dense<0.000000e+00> : vector<16x32xf32>
    %301 = tpu.matmul %298, %300, %cst_108 {dimension_numbers = #tpu.dot_dimension_numbers<[1], [0], [0], [1], [0, 0, 1, 1], [], []>} : vector<16x64xbf16>, vector<64x32xbf16>, vector<16x32xf32> -> vector<16x32xf32>
    %302 = vector.broadcast %180 : vector<1x32xf32> to vector<16x32xf32>
    %303 = arith.addf %301, %302 : vector<16x32xf32>
    %304 = arith.addf %303, %260 : vector<16x32xf32>
    %cst_109 = arith.constant dense<0.000000e+00> : vector<16xf32>
    %305 = vector.multi_reduction <add>, %304, %cst_109 [1] : vector<16x32xf32> to vector<16xf32>
    %306 = vector.shape_cast %305 : vector<16xf32> to vector<16x1xf32>
    %cst_110 = arith.constant 3.200000e+01 : f32
    %307 = vector.broadcast %cst_110 : f32 to vector<16x1xf32>
    %308 = arith.divf %306, %307 : vector<16x1xf32>
    %309 = vector.broadcast %308 : vector<16x1xf32> to vector<16x32xf32>
    %310 = arith.subf %304, %309 : vector<16x32xf32>
    %311 = arith.mulf %310, %310 : vector<16x32xf32>
    %cst_111 = arith.constant dense<0.000000e+00> : vector<16xf32>
    %312 = vector.multi_reduction <add>, %311, %cst_111 [1] : vector<16x32xf32> to vector<16xf32>
    %313 = vector.shape_cast %312 : vector<16xf32> to vector<16x1xf32>
    %cst_112 = arith.constant 3.200000e+01 : f32
    %314 = vector.broadcast %cst_112 : f32 to vector<16x1xf32>
    %315 = arith.divf %313, %314 : vector<16x1xf32>
    %316 = vector.broadcast %308 : vector<16x1xf32> to vector<16x32xf32>
    %317 = arith.subf %304, %316 : vector<16x32xf32>
    %cst_113 = arith.constant 9.99999974E-6 : f32
    %318 = vector.broadcast %cst_113 : f32 to vector<16x1xf32>
    %319 = arith.addf %315, %318 : vector<16x1xf32>
    %320 = math.rsqrt %319 : vector<16x1xf32>
    %321 = vector.broadcast %320 : vector<16x1xf32> to vector<16x32xf32>
    %322 = arith.mulf %317, %321 : vector<16x32xf32>
    %323 = vector.broadcast %178 : vector<1x32xf32> to vector<16x32xf32>
    %324 = arith.mulf %322, %323 : vector<16x32xf32>
    %325 = vector.broadcast %179 : vector<1x32xf32> to vector<16x32xf32>
    %326 = arith.addf %324, %325 : vector<16x32xf32>
    %c0_114 = arith.constant 0 : index
    %c0_115 = arith.constant 0 : index
    %327 = vector.load %arg9[%c0_114, %c0_115] : memref<16x32xf32, #tpu.memory_space<vmem>>, vector<16x32xf32>
    tpu.vector_store %arg9[%c0_114, %c0_115], %326 {strides = array<i32>} : memref<16x32xf32, #tpu.memory_space<vmem>>, vector<16x32xf32>,
    return
  }
}

</mosaic_0001>

<bundles_post_ra>
// kernel: tpu_custom_call.1
= control target key start
LH: loop header
LB: loop body
LE: loop exit
PB: predicated region body
PF: predicated region fallthrough
CT: control target
= control target key end

     0   :  { %v1892_v1 = vmov 0.0   ;;  %vm1893_vm0 = vmmov 0   ;;  %vm91_vm1 = vcmask 261120   ;;  %s2382_s0 = inlined_call_operand.vmem [shape: f32[16,32], index: 0, kind: input, shape index: {}]   ;;  %s2383_s1 = inlined_call_operand.vmem [shape: f32[16,16], index: 1, kind: input, shape index: {}]   ;;  %s2384_s2 = inlined_call_operand.vmem [shape: bf16[2,32,128], index: 2, kind: input, shape index: {}]   ;;  %s2385_s3 = inlined_call_operand.vmem [shape: f32[2,1,128], index: 3, kind: input, shape index: {}]   ;;  %s2386_s4 = inlined_call_operand.vmem [shape: bf16[2,32,32], index: 4, kind: input, shape index: {}]   ;;  %s2387_s5 = inlined_call_operand.vmem [shape: f32[2,6,32], index: 5, kind: input, shape index: {}]   ;;  %s2388_s6 = inlined_call_operand.vmem [shape: bf16[2,96,64], index: 6, kind: input, shape index: {}]   ;;  %s2389_s7 = inlined_call_operand.vmem [shape: f32[2,1,64], index: 7, kind: input, shape index: {}]   ;;  %s2390_s8 = inlined_call_operand.vmem [shape: bf16[2,64,32], index: 8, kind: input, shape index: {}]   ;;  %s2391_s9 = inlined_call_operand.hbm [shape: f32[16,32], index: 9, kind: output, shape index: {}]  }
   0x1   :  { %v1792_v0 = vld [vmem:[%s2384_s2] sm:$0xff]   ;;  %1614 = vmatprep.subr.bf16.mxu0 %v1892_v1  ;;  %1622 = vmatprep.subr.bf16.mxu1 %v1892_v1  ;;  %v1793_v2 = vld [vmem:[%s2384_s2 + $0x8] sm:$0xff]  }
   0x2   :  { %1615 = vmatpush3.bf16.msra.mxu0 %v1792_v0  ;;  %1618 = vmatprep.mubr.msk.bf16.mxu0 %vm1893_vm0, %v1892_v1  ;;  %v1967_v3 = vld [vmem:[%s2382_s0] sm:$0xff]  ;;  %v1972_v4 = vld [vmem:[%s2382_s0 + $0x8] sm:$0xff] }
   0x3   :  { %1616 = vmatprep.subr.bf16.mxu0 %v1892_v1  ;;  %1624 = vmatprep.mubr.msk.bf16.mxu1 %vm1893_vm0, %v1892_v1  ;;  %v67_v5 = vpack.c.bf16 %v1972_v4, %v1967_v3 }
   0x6   :  { %1617 = vmatpush3.bf16.msra.mxu0 %v1793_v2 }
   0x7   :  { %1628 = vmatprep.subr.bf16.mxu0 %v1892_v1 }
   0x9   :  { %1619 = vmatmul.mubr.msk.bf16.vlgmr.msra.gmra.mrb[0].mxu0 %vm91_vm1, %v67_v5 }
   0xa   :  { %1630 = vmatprep.mubr.msk.bf16.mxu0 %vm1893_vm0, %v1892_v1 }
   0xb   :  { %14 = vsyncpa [#allocation3], 0  ;;  %v1483_v6 = vld [vmem:[%s2385_s3] ss:$0 sm:$0xff]  ;;  %s1894_s18 = smov 112   ;;  %s1895_s19 = smov 96  }
   0xc   :  { %s1896_s20 = smov 80   ;;  %vm140_vm2 = vcmask 130048   ;;  %v2008_v19 = vld [vmem:[%s2383_s1] sm:$0xff]  ;;  %v2013_v21 = vld [vmem:[%s2383_s1 + $0x8] sm:$0xff]  ;;  %s1897_s1 = smov 48   ;;  %vm551_vm9 = vcmask 523264  }
   0xd   :  { %s1898_s25 = smov 64   ;;  %s1899_s30 = smov 16   ;;  %vm609_vm10 = vcmask 785408  }
   0xe   :  { %s1900_s11 = smov 32  }
  0xdc   :  { %v129_v7 = vpop.f32.mrb[0].mxu0 }
  0xdd   :  { %v1620_v8 = vpop.f32.mrb[1].mxu0  ;;  %v130_v10 = vadd.f32 %v1483_v6, %v129_v7 }
  0xde   :  { %v132_v9 = vpop.f32.mrb[2].mxu0 }
  0xdf   :  { %v133_v11 = vadd.f32 %v1483_v6, %v132_v9  ;;  %v1621_v12 = vpop.f32.mrb[3].mxu0 }
  0xe0   :  { %v1794_v12 = vld [vmem:[%s2386_s4] sm:$0xff]  }
  0xe1   :  { %v1986_v13 = vpack.c.bf16 %v133_v11, %v130_v10 }
  0xe3   :  { %258 = vrot.lane.b32.xlu1 %v1986_v13, %s1894_s18  ;;  %138 = vrot.lane.b32.xlu0 %v1986_v13, %s1895_s19 }
  0xe7   :  { %260 = vrot.lane.b32.xlu0 %v1986_v13, %s1896_s20 }
 0x155   :  { %v139_v14 = vpop.permute.xlu0 %138  ;;  %v259_v18 = vpop.permute.xlu1 %258 }
 0x156   :  { %v145_v15 = vsel %vm140_vm2, %v139_v14, 0 }
 0x157   :  { %1623 = vmatpush3.bf16.xpose.msra.mxu1 %v145_v15  ;;  %v1795_v15 = vld [vmem:[%s2386_s4 + $0x8] sm:$0xff]  }
 0x158   :  { %1634 = vmatprep.subr.bf16.mxu1 %v1892_v1 }
 0x159   :  { %v261_v16 = vpop.permute.xlu0 %260 }
 0x15a   :  { %v266_v17 = vsel %vm140_vm2, %v261_v16, 0 }
 0x15e   :  { %1625 = vmatmul.mubr.msk.bf16.vlgmr.msra.gmra.mrb[0].mxu1 %vm140_vm2, %v1986_v13 }
 0x15f   :  { %1635 = vmatpush3.bf16.xpose.msra.mxu1 %v266_v17  ;;  %1636 = vmatprep.mubr.msk.bf16.mxu1 %vm1893_vm0, %v1892_v1 }
 0x160   :  { %1646 = vmatprep.subr.bf16.mxu1 %v1892_v1 }
 0x166   :  { %1637 = vmatmul.mubr.msk.bf16.vlgmr.msra.gmra.mrb[4].mxu1 %vm140_vm2, %v259_v18 }
 0x167   :  { %1650 = vmatprep.mubr.msk.bf16.mxu1 %vm1893_vm0, %v1892_v1  ;;  %1647 = vmatpush3.bf16.msra.mxu1 %v1794_v12 }
 0x168   :  { %1648 = vmatprep.subr.bf16.mxu1 %v1892_v1 }
 0x16b   :  { %1649 = vmatpush3.bf16.msra.mxu1 %v1795_v15 }
 0x16c   :  { %1670 = vmatprep.subr.bf16.mxu1 %v1892_v1 }
 0x231   :  { %v181_v20 = vpop.f32.mrb[0].mxu1 }
 0x232   :  { %v182_v22 = vadd.f32 %v181_v20, %v2008_v19  ;;  %v1626_v23 = vpop.f32.mrb[1].mxu1 }
 0x233   :  { %v184_v24 = vpop.f32.mrb[2].mxu1 }
 0x234   :  { %v185_v25 = vadd.f32 %v184_v24, %v2013_v21  ;;  %v1627_v26 = vpop.f32.mrb[3].mxu1  ;;  %v188_v27 = vsel %vm140_vm2, %v182_v22, -inf }
 0x235   :  { %189 = vmax.xlane.f32.xlu1 %v188_v27 }
 0x236   :  { %v191_v28 = vsel %vm140_vm2, %v185_v25, -inf }
 0x237   :  { %192 = vmax.xlane.f32.xlu0 %v191_v28 }
 0x239   :  { %v302_v29 = vpop.f32.mrb[4].mxu1 }
 0x23a   :  { %v303_v30 = vadd.f32 %v302_v29, %v2008_v19  ;;  %v1638_v31 = vpop.f32.mrb[5].mxu1 }
 0x23b   :  { %v305_v32 = vpop.f32.mrb[6].mxu1  ;;  %v38_v31 = vlaneseq }
 0x23c   :  { %v306_v33 = vadd.f32 %v305_v32, %v2013_v21  ;;  %v1639_v34 = vpop.f32.mrb[7].mxu1  ;;  %v309_v35 = vsel %vm140_vm2, %v303_v30, -inf }
 0x23d   :  { %310 = vmax.xlane.f32.xlu0 %v309_v35  ;;  %v2053_v32 = vshrl.u32 %v38_v31, 7  ;;  %v2059_v34 = vld [vmem:[%s2387_s5] sm:$0x3f] }
 0x23e   :  { %v312_v36 = vsel %vm140_vm2, %v306_v33, -inf }
 0x23f   :  { %313 = vmax.xlane.f32.xlu1 %v312_v36  ;;  %vm516_vm3 = vcmp.lt.s32.totalorder %v2053_v32, 7  ;;  %vm497_vm6 = vcmp.lt.s32.totalorder %v2053_v32, 1 }
 0x2c2   :  { %v190_v37 = vpop.xlane.xlu1 %189 }
 0x2c3   :  { %v194_v38 = vsub.f32 %v182_v22, %v190_v37 }
 0x2c4   :  { %v193_v39 = vpop.xlane.xlu0 %192 }
 0x2c5   :  { %v196_v40 = vmul.f32 1.442695, %v194_v38  ;;  %v195_v41 = vsub.f32 %v185_v25, %v193_v39 }
 0x2c7   :  { %1820 = vpow2.f32 %v196_v40  ;;  %v198_v42 = vmul.f32 1.442695, %v195_v41 }
 0x2c9   :  { %1822 = vpow2.f32 %v198_v42 }
 0x2ca   :  { %v311_v43 = vpop.xlane.xlu0 %310 }
 0x2cb   :  { %v315_v44 = vsub.f32 %v303_v30, %v311_v43 }
 0x2cc   :  { %v314_v45 = vpop.xlane.xlu1 %313 }
 0x2cd   :  { %v317_v46 = vmul.f32 1.442695, %v315_v44  ;;  %v316_v47 = vsub.f32 %v306_v33, %v314_v45  ;;  %v396_v33 = vsub.s32 0, %v2053_v32 }
 0x2cf   :  { %1824 = vpow2.f32 %v317_v46  ;;  %v319_v48 = vmul.f32 1.442695, %v316_v47  ;;  %v397_v35 = vrot.slane %v2059_v34, %v396_v33 }
 0x2d1   :  { %v1821_v49 = vpop.eup %1820  ;;  %1826 = vpow2.f32 %v319_v48 }
 0x2d2   :  { %v200_v50 = vsel %vm140_vm2, %v1821_v49, 0.0 }
 0x2d3   :  { %v1823_v51 = vpop.eup %1822  ;;  %201 = vadd.xlane.f32.xlu0 %v200_v50 }
 0x2d4   :  { %v203_v52 = vsel %vm140_vm2, %v1823_v51, 0.0 }
 0x2d5   :  { %204 = vadd.xlane.f32.xlu1 %v203_v52 }
 0x2d9   :  { %v1825_v53 = vpop.eup %1824 }
 0x2da   :  { %v321_v54 = vsel %vm140_vm2, %v1825_v53, 0.0 }
 0x2db   :  { %v1827_v55 = vpop.eup %1826  ;;  %322 = vadd.xlane.f32.xlu0 %v321_v54 }
 0x2dc   :  { %v324_v56 = vsel %vm140_vm2, %v1827_v55, 0.0 }
 0x2dd   :  { %325 = vadd.xlane.f32.xlu1 %v324_v56  ;;  %v1798_v56 = vld [vmem:[%s2388_s6 + $0x10] sm:$0xff]  }
 0x2ee   :  { %332 = vrot.lane.b32.xlu1 %v1986_v13, %s1897_s1 }
 0x2f1   :  { %211 = vrot.lane.b32.xlu0 %v1986_v13, %s1898_s25 }
 0x360   :  { %v202_v57 = vpop.xlane.xlu0 %201 }
 0x361   :  { %1828 = vrcp.f32 %v202_v57  ;;  %v1799_v57 = vld [vmem:[%s2388_s6 + $0x18] sm:$0xff]  }
 0x362   :  { %v205_v58 = vpop.xlane.xlu1 %204 }
 0x363   :  { %1830 = vrcp.f32 %v205_v58 }
 0x368   :  { %v323_v59 = vpop.xlane.xlu0 %322 }
 0x369   :  { %1832 = vrcp.f32 %v323_v59 }
 0x36a   :  { %v326_v60 = vpop.xlane.xlu1 %325 }
 0x36b   :  { %v1829_v61 = vpop.eup %1828  ;;  %1834 = vrcp.f32 %v326_v60 }
 0x36c   :  { %v212_v62 = vpop.permute.xlu0 %211  ;;  %v208_v0 = vmul.f32 %v1829_v61, %v1821_v49 }
 0x36d   :  { %v1831_v63 = vpop.eup %1830  ;;  %1629 = vmatpush3.bf16.msra.mxu0 %v212_v62 }
 0x36e   :  { %v209_v2 = vmul.f32 %v1831_v63, %v1823_v51  ;;  %1640 = vmatprep.subr.bf16.mxu0 %v1892_v1  ;;  %v333_v6 = vpop.permute.xlu1 %332 }
 0x370   :  { %v210_v5 = vpack.c.bf16 %v209_v2, %v208_v0  ;;  %v485_v0 = vsub.s32 1, %v2053_v32 }
 0x372   :  { %1631 = vmatmul.mubr.msk.bf16.vlgmr.msra.gmra.mrb[4].mxu0 %vm140_vm2, %v210_v5  ;;  %v486_v2 = vrot.slane %v2059_v34, %v485_v0  ;;  %v491_v5 = vsub.s32 2, %v2053_v32 }
 0x373   :  { %v1833_v7 = vpop.eup %1832  ;;  %1641 = vmatpush3.bf16.msra.mxu0 %v333_v6  ;;  %1642 = vmatprep.mubr.msk.bf16.mxu0 %vm1893_vm0, %v1892_v1  ;;  %v40_v6 = vadd.s32 8, %v2053_v32 }
 0x374   :  { %1654 = vmatprep.subr.bf16.mxu0 %v1892_v1  ;;  %v329_v9 = vmul.f32 %v1833_v7, %v1825_v53  ;;  %v492_v12 = vrot.slane %v2059_v34, %v491_v5 }
 0x375   :  { %v1835_v8 = vpop.eup %1834 }
 0x376   :  { %v330_v10 = vmul.f32 %v1835_v8, %v1827_v55  ;;  %v1797_v55 = vld [vmem:[%s2388_s6 + $0x8] sm:$0xff]  }
 0x378   :  { %v331_v11 = vpack.c.bf16 %v330_v10, %v329_v9  ;;  %v1800_v9 = vld [vmem:[%s2388_s6 + $0x20] sm:$0xff]   ;;  %v45_v10 = vand.u32 7, %v2053_v32 }
 0x37a   :  { %1643 = vmatmul.mubr.msk.bf16.vlgmr.msra.gmra.mrb[8].mxu0 %vm140_vm2, %v331_v11 }
 0x37b   :  { %1666 = vmatprep.mubr.msk.bf16.mxu0 %vm1893_vm0, %v1892_v1 }
 0x445   :  { %v251_v13 = vpop.f32.mrb[4].mxu0 }
 0x446   :  { %v1632_v14 = vpop.f32.mrb[5].mxu0 }
 0x447   :  { %v254_v16 = vpop.f32.mrb[6].mxu0 }
 0x448   :  { %v1633_v17 = vpop.f32.mrb[7].mxu0 }
 0x449   :  { %v2103_v17 = vadd.s32 1, %v45_v10 }
 0x44b   :  { %vm523_vm4 = vcmp.lt.s32.totalorder %v2103_v17, 8 }
 0x44d   :  { %v372_v18 = vpop.f32.mrb[8].mxu0 }
 0x44e   :  { %v1644_v20 = vpop.f32.mrb[9].mxu0 }
 0x44f   :  { %v375_v22 = vpop.f32.mrb[10].mxu0 }
 0x450   :  { %v1762_v23 = vpack.i.bf16 %v375_v22, %v372_v18  ;;  %v1645_v24 = vpop.f32.mrb[11].mxu0 }
 0x451   :  { %v1802_v24 = vld [vmem:[%s2390_s8] sm:$0xff]  }
 0x452   :  { %1763 = vrot.lane.b32.xlu1 %v1762_v23, %s1899_s30 }
 0x4c4   :  { %v1764_v25 = vpop.permute.xlu1 %1763 }
 0x4c5   :  { %v1766_v26 = vunpack.i.h.bf16 %v1764_v25  ;;  %v1765_v27 = vunpack.i.l.bf16 %v1764_v25 }
 0x4c7   :  { %v388_v28 = vsel %vm140_vm2, %v254_v16, %v1766_v26  ;;  %v387_v29 = vsel %vm140_vm2, %v251_v13, %v1765_v27  ;;  %v52_v13 = vand.u32 7, %v40_v6  ;;  %v1801_v16 = vld [vmem:[%s2388_s6 + $0x28] sm:$0xff]  }
 0x4c8   :  { %v389_v30 = vpack.c.bf16 %v388_v28, %v387_v29  ;;  %v1803_v28 = vld [vmem:[%s2390_s8 + $0x8] sm:$0xff]  }
 0x4c9   :  { %v2107_v22 = vadd.s32 1, %v52_v13 }
 0x4ca   :  { %1651 = vmatmul.mubr.msk.bf16.vlgmr.msra.gmra.mrb[8].mxu1 %vm91_vm1, %v389_v30 }
 0x4cb   :  { %1678 = vmatprep.mubr.msk.bf16.mxu1 %vm1893_vm0, %v1892_v1  ;;  %vm524_vm5 = vcmp.lt.s32.totalorder %v2107_v22, 8  ;;  %1671 = vmatpush3.bf16.msra.mxu1 %v1802_v24 }
 0x4cc   :  { %1672 = vmatprep.subr.bf16.mxu1 %v1892_v1 }
 0x4cf   :  { %1673 = vmatpush3.bf16.msra.mxu1 %v1803_v28 }
 0x4d0   :  { %1674 = vmatprep.subr.bf16.mxu1 %v1892_v1 }
 0x59d   :  { %v447_v36 = vpop.f32.mrb[8].mxu1 }
 0x59e   :  { %v448_v37 = vadd.f32 %v447_v36, %v397_v35  ;;  %v1652_v38 = vpop.f32.mrb[9].mxu1 }
 0x59f   :  { %v450_v39 = vpop.f32.mrb[10].mxu1  ;;  %v2139_v38 = vadd.s32 4294967295, %v52_v13 }
 0x5a0   :  { %v451_v40 = vadd.f32 %v450_v39, %v397_v35  ;;  %v1653_v41 = vpop.f32.mrb[11].mxu1  ;;  %v454_v42 = vadd.f32 %v448_v37, %v1967_v3  ;;  %v2137_v37 = vadd.s32 4294967295, %v45_v10 }
 0x5a1   :  { %vm503_vm8 = vcmp.ge.s32.totalorder %v2139_v38, 0  ;;  %v1819_v38 = vld [vmem:[%s2390_s8 + $0x38] sm:$0xff]  }
 0x5a2   :  { %v456_v43 = vsel %vm91_vm1, %v454_v42, 0.0  ;;  %v455_v44 = vadd.f32 %v451_v40, %v1972_v4  ;;  %v1796_v4 = vld [vmem:[%s2388_s6] sm:$0xff]   ;;  %vm502_vm7 = vcmp.ge.s32.totalorder %v2137_v37, 0  ;;  %v1818_v37 = vld [vmem:[%s2390_s8 + $0x30] sm:$0xff]  }
 0x5a3   :  { %457 = vadd.xlane.f32.xlu0 %v456_v43  ;;  %1655 = vmatpush3.bf16.msra.mxu0 %v1796_v4  ;;  %v1804_v4 = vld [vmem:[%s2390_s8 + $0x10] sm:$0xff]  }
 0x5a4   :  { %v459_v45 = vsel %vm91_vm1, %v455_v44, 0.0  ;;  %1656 = vmatprep.subr.bf16.mxu0 %v1892_v1  ;;  %1675 = vmatpush3.bf16.msra.mxu1 %v1804_v4 }
 0x5a5   :  { %460 = vadd.xlane.f32.xlu1 %v459_v45  ;;  %1676 = vmatprep.subr.bf16.mxu1 %v1892_v1 }
 0x5a7   :  { %1657 = vmatpush3.bf16.msra.mxu0 %v1797_v55  ;;  %v1805_v55 = vld [vmem:[%s2390_s8 + $0x18] sm:$0xff]  }
 0x5a8   :  { %1658 = vmatprep.subr.bf16.mxu0 %v1892_v1  ;;  %1677 = vmatpush3.bf16.msra.mxu1 %v1805_v55 }
 0x5a9   :  { %1682 = vmatprep.subr.bf16.mxu1 %v1892_v1 }
 0x5ab   :  { %1659 = vmatpush3.bf16.msra.mxu0 %v1798_v56  ;;  %v1494_v56 = vld [vmem:[%s2389_s7] ss:$0 sm:$0xff] }
 0x5ac   :  { %1660 = vmatprep.subr.bf16.mxu0 %v1892_v1 }
 0x5af   :  { %1661 = vmatpush3.bf16.msra.mxu0 %v1799_v57 }
 0x5b0   :  { %1662 = vmatprep.subr.bf16.mxu0 %v1892_v1 }
 0x5b3   :  { %1663 = vmatpush3.bf16.msra.mxu0 %v1800_v9 }
 0x5b4   :  { %1664 = vmatprep.subr.bf16.mxu0 %v1892_v1 }
 0x5b7   :  { %1665 = vmatpush3.bf16.msra.mxu0 %v1801_v16 }
 0x5b8   :  { %1690 = vmatprep.subr.bf16.mxu0 %v1892_v1 }
 0x630   :  { %v458_v46 = vpop.xlane.xlu0 %457 }
 0x631   :  { %v463_v47 = vmul.f32 0.03125, %v458_v46 }
 0x632   :  { %v461_v48 = vpop.xlane.xlu1 %460 }
 0x633   :  { %v465_v49 = vsub.f32 %v454_v42, %v463_v47  ;;  %v464_v50 = vmul.f32 0.03125, %v461_v48 }
 0x635   :  { %v466_v51 = vsub.f32 %v455_v44, %v464_v50  ;;  %v467_v52 = vmul.f32 %v465_v49, %v465_v49 }
 0x637   :  { %v469_v53 = vsel %vm91_vm1, %v467_v52, 0.0  ;;  %v468_v54 = vmul.f32 %v466_v51, %v466_v51 }
 0x638   :  { %470 = vadd.xlane.f32.xlu0 %v469_v53 }
 0x639   :  { %v472_v3 = vsel %vm91_vm1, %v468_v54, 0.0 }
 0x63c   :  { %473 = vadd.xlane.f32.xlu0 %v472_v3 }
 0x6c5   :  { %v471_v58 = vpop.xlane.xlu0 %470 }
 0x6c6   :  { %v475_v59 = vmul.f32 0.03125, %v471_v58 }
 0x6c8   :  { %v477_v60 = vadd.f32 1e-05, %v475_v59 }
 0x6c9   :  { %v474_v61 = vpop.xlane.xlu0 %473 }
 0x6ca   :  { %1836 = vrsqrt.f32 %v477_v60  ;;  %v476_v62 = vmul.f32 0.03125, %v474_v61 }
 0x6cc   :  { %v478_v63 = vadd.f32 1e-05, %v476_v62 }
 0x6ce   :  { %1838 = vrsqrt.f32 %v478_v63 }
 0x6d4   :  { %v1837_v7 = vpop.eup %1836 }
 0x6d5   :  { %v481_v8 = vmul.f32 %v1837_v7, %v465_v49  ;;  %v667_v7 = vsub.s32 5, %v2053_v32 }
 0x6d7   :  { %v487_v11 = vmul.f32 %v486_v2, %v481_v8  ;;  %v668_v8 = vrot.slane %v2059_v34, %v667_v7 }
 0x6d8   :  { %v1839_v14 = vpop.eup %1838 }
 0x6d9   :  { %v482_v15 = vmul.f32 %v1839_v14, %v466_v51  ;;  %v2105_v20 = vadd.f32 %v492_v12, %v487_v11 }
 0x6db   :  { %v488_v18 = vmul.f32 %v486_v2, %v482_v15  ;;  %v514_v26 = vrot.slane %v2105_v20, 1  ;;  %v495_v40 = vrot.slane %v2105_v20, 7 }
 0x6dd   :  { %v2110_v23 = vadd.f32 %v492_v12, %v488_v18 }
 0x6df   :  { %v1767_v25 = vpack.i.bf16 %v2110_v23, %v2105_v20  ;;  %v515_v27 = vrot.slane %v2110_v23, 1  ;;  %v496_v39 = vrot.slane %v2110_v23, 7 }
 0x6e1   :  { %1768 = vrot.lane.b32.xlu1 %v1767_v25, %s1900_s11  ;;  %v517_v29 = vsel %vm516_vm3, %v514_v26, %v515_v27  ;;  %v518_v30 = vsel %vm516_vm3, %v515_v27, %v514_v26  ;;  %v498_v44 = vsel %vm497_vm6, %v495_v40, %v496_v39  ;;  %v499_v45 = vsel %vm497_vm6, %v496_v39, %v495_v40  ;;  %v1807_v39 = vld [vmem:[%s2384_s2 + $0x18] sm:$0xff]  }
 0x6e2   :  { %v531_v31 = vsel %vm523_vm4, %v517_v29, 0.0  ;;  %v532_v35 = vsel %vm524_vm5, %v518_v30, 0.0  ;;  %v512_v47 = vsel %vm502_vm7, %v499_v45, 0.0  ;;  %v513_v48 = vsel %vm503_vm8, %v498_v44, 0.0 }
 0x6e3   :  { %v1772_v36 = vpack.i.bf16 %v532_v35, %v531_v31 }
 0x6e5   :  { %1773 = vrot.lane.b32.xlu0 %v1772_v36, %s1898_s25 }
 0x753   :  { %v1769_v41 = vpop.permute.xlu1 %1768 }
 0x754   :  { %v1771_v42 = vunpack.i.h.bf16 %v1769_v41  ;;  %v1770_v43 = vunpack.i.l.bf16 %v1769_v41 }
 0x756   :  { %v549_v51 = vsel %vm91_vm1, %v512_v47, %v1770_v43  ;;  %v550_v52 = vsel %vm91_vm1, %v513_v48, %v1771_v42  ;;  %v773_v48 = vsub.s32 4, %v2053_v32 }
 0x757   :  { %v1774_v46 = vpop.permute.xlu0 %1773 }
 0x758   :  { %v1776_v49 = vunpack.i.h.bf16 %v1774_v46  ;;  %v1775_v50 = vunpack.i.l.bf16 %v1774_v46  ;;  %v767_v46 = vsub.s32 3, %v2053_v32 }
 0x75a   :  { %v552_v53 = vsel %vm551_vm9, %v549_v51, %v1775_v50  ;;  %v553_v54 = vsel %vm551_vm9, %v550_v52, %v1776_v49  ;;  %v768_v47 = vrot.slane %v2059_v34, %v767_v46 }
 0x75b   :  { %v554_v3 = vpack.c.bf16 %v553_v54, %v552_v53  ;;  %v774_v54 = vrot.slane %v2059_v34, %v773_v48 }
 0x75d   :  { %1667 = vmatmul.mubr.msk.bf16.vlgmr.msra.gmra.mrb[12].mxu0 %vm609_vm10, %v554_v3 }
 0x75e   :  { %1692 = vmatprep.mubr.msk.bf16.mxu0 %vm1893_vm0, %v1892_v1 }
 0x830   :  { %v647_v57 = vpop.f32.mrb[12].mxu0 }
 0x831   :  { %v648_v58 = vadd.f32 %v1494_v56, %v647_v57  ;;  %v1668_v59 = vpop.f32.mrb[13].mxu0  ;;  %v1514_v57 = vld [vmem:[%s2385_s3 + $0x1] ss:$0 sm:$0xff] }
 0x832   :  { %v650_v60 = vpop.f32.mrb[14].mxu0 }
 0x833   :  { %v651_v61 = vadd.f32 %v1494_v56, %v650_v60  ;;  %v1669_v62 = vpop.f32.mrb[15].mxu0  ;;  %v654_v63 = vmax.f32 %v648_v58, 0.0 }
 0x835   :  { %v655_v2 = vmax.f32 %v651_v61, 0.0 }
 0x837   :  { %v656_v6 = vpack.c.bf16 %v655_v2, %v654_v63 }
 0x839   :  { %1679 = vmatmul.mubr.msk.bf16.vlgmr.msra.gmra.mrb[12].mxu1 %vm551_vm9, %v656_v6 }
 0x83a   :  { %1686 = vmatprep.mubr.msk.bf16.mxu1 %vm1893_vm0, %v1892_v1 }
 0x90c   :  { %v730_v9 = vpop.f32.mrb[12].mxu1 }
 0x90d   :  { %v731_v10 = vadd.f32 %v730_v9, %v668_v8  ;;  %v1680_v11 = vpop.f32.mrb[13].mxu1 }
 0x90e   :  { %v733_v12 = vpop.f32.mrb[14].mxu1 }
 0x90f   :  { %v734_v13 = vadd.f32 %v733_v12, %v668_v8  ;;  %v1681_v14 = vpop.f32.mrb[15].mxu1  ;;  %v737_v15 = vadd.f32 %v731_v10, %v2105_v20 }
 0x911   :  { %v739_v16 = vsel %vm91_vm1, %v737_v15, 0.0  ;;  %v738_v18 = vadd.f32 %v734_v13, %v2110_v23  ;;  %v1806_v23 = vld [vmem:[%s2384_s2 + $0x10] sm:$0xff]  }
 0x912   :  { %740 = vadd.xlane.f32.xlu1 %v739_v16  ;;  %1683 = vmatpush3.bf16.msra.mxu1 %v1806_v23 }
 0x913   :  { %v742_v24 = vsel %vm91_vm1, %v738_v18, 0.0  ;;  %1684 = vmatprep.subr.bf16.mxu1 %v1892_v1 }
 0x914   :  { %743 = vadd.xlane.f32.xlu0 %v742_v24 }
 0x916   :  { %1685 = vmatpush3.bf16.msra.mxu1 %v1807_v39 }
 0x917   :  { %1696 = vmatprep.subr.bf16.mxu1 %v1892_v1 }
 0x99f   :  { %v741_v25 = vpop.xlane.xlu1 %740 }
 0x9a0   :  { %v745_v26 = vmul.f32 0.03125, %v741_v25 }
 0x9a1   :  { %v744_v27 = vpop.xlane.xlu0 %743 }
 0x9a2   :  { %v747_v28 = vsub.f32 %v737_v15, %v745_v26  ;;  %v746_v29 = vmul.f32 0.03125, %v744_v27 }
 0x9a4   :  { %v748_v30 = vsub.f32 %v738_v18, %v746_v29  ;;  %v749_v31 = vmul.f32 %v747_v28, %v747_v28 }
 0x9a6   :  { %v751_v35 = vsel %vm91_vm1, %v749_v31, 0.0  ;;  %v750_v36 = vmul.f32 %v748_v30, %v748_v30 }
 0x9a7   :  { %752 = vadd.xlane.f32.xlu1 %v751_v35 }
 0x9a8   :  { %v754_v20 = vsel %vm91_vm1, %v750_v36, 0.0 }
 0x9a9   :  { %755 = vadd.xlane.f32.xlu0 %v754_v20 }
 0xa34   :  { %v753_v40 = vpop.xlane.xlu1 %752 }
 0xa35   :  { %v757_v41 = vmul.f32 0.03125, %v753_v40 }
 0xa36   :  { %v756_v42 = vpop.xlane.xlu0 %755 }
 0xa37   :  { %v759_v43 = vadd.f32 1e-05, %v757_v41  ;;  %v758_v44 = vmul.f32 0.03125, %v756_v42 }
 0xa39   :  { %1840 = vrsqrt.f32 %v759_v43  ;;  %v760_v45 = vadd.f32 1e-05, %v758_v44 }
 0xa3b   :  { %1842 = vrsqrt.f32 %v760_v45 }
 0xa43   :  { %v1841_v49 = vpop.eup %1840 }
 0xa44   :  { %v763_v50 = vmul.f32 %v1841_v49, %v747_v28 }
 0xa45   :  { %v1843_v51 = vpop.eup %1842 }
 0xa46   :  { %v769_v52 = vmul.f32 %v768_v47, %v763_v50  ;;  %v764_v53 = vmul.f32 %v1843_v51, %v748_v30 }
 0xa48   :  { %v770_v3 = vmul.f32 %v768_v47, %v764_v53  ;;  %v2201_v4 = vadd.f32 %v774_v54, %v769_v52 }
 0xa4a   :  { %v2203_v55 = vadd.f32 %v774_v54, %v770_v3 }
 0xa4c   :  { %v781_v56 = vpack.c.bf16 %v2203_v55, %v2201_v4 }
 0xa4e   :  { %1687 = vmatmul.mubr.msk.bf16.vlgmr.msra.gmra.mrb[16].mxu1 %vm91_vm1, %v781_v56 }
 0xa4f   :  { %1698 = vmatprep.mubr.msk.bf16.mxu1 %vm1893_vm0, %v1892_v1 }
 0xb21   :  { %v844_v58 = vpop.f32.mrb[16].mxu1 }
 0xb22   :  { %v1688_v59 = vpop.f32.mrb[17].mxu1  ;;  %v845_v60 = vadd.f32 %v1514_v57, %v844_v58 }
 0xb23   :  { %v847_v34 = vpop.f32.mrb[18].mxu1 }
 0xb24   :  { %v848_v61 = vadd.f32 %v1514_v57, %v847_v34  ;;  %v1689_v62 = vpop.f32.mrb[19].mxu1 }
 0xb26   :  { %v2213_v63 = vpack.c.bf16 %v848_v61, %v845_v60 }
 0xb28   :  { %974 = vrot.lane.b32.xlu0 %v2213_v63, %s1896_s20  ;;  %853 = vrot.lane.b32.xlu1 %v2213_v63, %s1895_s19 }
 0xb2c   :  { %972 = vrot.lane.b32.xlu1 %v2213_v63, %s1894_s18 }
 0xb9a   :  { %v854_v2 = vpop.permute.xlu1 %853  ;;  %v975_v8 = vpop.permute.xlu0 %974 }
 0xb9b   :  { %v859_v6 = vsel %vm140_vm2, %v854_v2, 0  ;;  %v980_v9 = vsel %vm140_vm2, %v975_v8, 0 }
 0xb9c   :  { %1691 = vmatpush3.bf16.xpose.msra.mxu0 %v859_v6 }
 0xb9d   :  { %1702 = vmatprep.subr.bf16.mxu0 %v1892_v1 }
 0xb9e   :  { %v973_v10 = vpop.permute.xlu1 %972 }
 0xba3   :  { %1693 = vmatmul.mubr.msk.bf16.vlgmr.msra.gmra.mrb[16].mxu0 %vm140_vm2, %v2213_v63 }
 0xba4   :  { %1703 = vmatpush3.bf16.xpose.msra.mxu0 %v980_v9  ;;  %1704 = vmatprep.mubr.msk.bf16.mxu0 %vm1893_vm0, %v1892_v1 }
 0xba5   :  { %1714 = vmatprep.subr.bf16.mxu0 %v1892_v1 }
 0xbab   :  { %1705 = vmatmul.mubr.msk.bf16.vlgmr.msra.gmra.mrb[20].mxu0 %vm140_vm2, %v973_v10 }
 0xbac   :  { %1718 = vmatprep.mubr.msk.bf16.mxu0 %vm1893_vm0, %v1892_v1 }
 0xc76   :  { %v895_v11 = vpop.f32.mrb[16].mxu0 }
 0xc77   :  { %v896_v12 = vadd.f32 %v895_v11, %v2008_v19  ;;  %v1694_v13 = vpop.f32.mrb[17].mxu0 }
 0xc78   :  { %v898_v14 = vpop.f32.mrb[18].mxu0  ;;  %v1808_v13 = vld [vmem:[%s2386_s4 + $0x10] sm:$0xff]  }
 0xc79   :  { %v899_v15 = vadd.f32 %v898_v14, %v2013_v21  ;;  %v1695_v16 = vpop.f32.mrb[19].mxu0  ;;  %v902_v18 = vsel %vm140_vm2, %v896_v12, -inf  ;;  %1715 = vmatpush3.bf16.msra.mxu0 %v1808_v13 }
 0xc7a   :  { %903 = vmax.xlane.f32.xlu1 %v902_v18  ;;  %1716 = vmatprep.subr.bf16.mxu0 %v1892_v1  ;;  %v1809_v16 = vld [vmem:[%s2386_s4 + $0x18] sm:$0xff]  }
 0xc7b   :  { %v905_v24 = vsel %vm140_vm2, %v899_v15, -inf }
 0xc7c   :  { %906 = vmax.xlane.f32.xlu0 %v905_v24 }
 0xc7d   :  { %1717 = vmatpush3.bf16.msra.mxu0 %v1809_v16 }
 0xc7e   :  { %v1016_v25 = vpop.f32.mrb[20].mxu0  ;;  %1738 = vmatprep.subr.bf16.mxu0 %v1892_v1 }
 0xc7f   :  { %v1017_v26 = vadd.f32 %v1016_v25, %v2008_v19  ;;  %v1706_v27 = vpop.f32.mrb[21].mxu0 }
 0xc80   :  { %v1019_v28 = vpop.f32.mrb[22].mxu0 }
 0xc81   :  { %v1020_v29 = vadd.f32 %v1019_v28, %v2013_v21  ;;  %v1707_v30 = vpop.f32.mrb[23].mxu0  ;;  %v1023_v31 = vsel %vm140_vm2, %v1017_v26, -inf }
 0xc82   :  { %1024 = vmax.xlane.f32.xlu0 %v1023_v31 }
 0xc83   :  { %v1026_v35 = vsel %vm140_vm2, %v1020_v29, -inf }
 0xc84   :  { %1027 = vmax.xlane.f32.xlu1 %v1026_v35 }
 0xd07   :  { %v904_v36 = vpop.xlane.xlu1 %903 }
 0xd08   :  { %v908_v20 = vsub.f32 %v896_v12, %v904_v36 }
 0xd09   :  { %v907_v23 = vpop.xlane.xlu0 %906 }
 0xd0a   :  { %v910_v39 = vmul.f32 1.442695, %v908_v20  ;;  %v909_v40 = vsub.f32 %v899_v15, %v907_v23 }
 0xd0c   :  { %1844 = vpow2.f32 %v910_v39  ;;  %v912_v41 = vmul.f32 1.442695, %v909_v40  ;;  %v2273_v39 = vld [vmem:[%s2387_s5 + $0x8] sm:$0x3f] }
 0xd0d   :  { %v1112_v40 = vrot.slane %v2273_v39, %v396_v33 }
 0xd0e   :  { %1846 = vpow2.f32 %v912_v41 }
 0xd0f   :  { %v1025_v19 = vpop.xlane.xlu0 %1024 }
 0xd10   :  { %v1029_v42 = vsub.f32 %v1017_v26, %v1025_v19 }
 0xd11   :  { %v1028_v43 = vpop.xlane.xlu1 %1027 }
 0xd12   :  { %v1031_v44 = vmul.f32 1.442695, %v1029_v42  ;;  %v1030_v21 = vsub.f32 %v1020_v29, %v1028_v43 }
 0xd14   :  { %1848 = vpow2.f32 %v1031_v44  ;;  %v1033_v45 = vmul.f32 1.442695, %v1030_v21 }
 0xd16   :  { %v1845_v47 = vpop.eup %1844  ;;  %1850 = vpow2.f32 %v1033_v45 }
 0xd17   :  { %v914_v49 = vsel %vm140_vm2, %v1845_v47, 0.0 }
 0xd18   :  { %v1847_v50 = vpop.eup %1846  ;;  %915 = vadd.xlane.f32.xlu0 %v914_v49 }
 0xd19   :  { %v917_v51 = vsel %vm140_vm2, %v1847_v50, 0.0 }
 0xd1a   :  { %918 = vadd.xlane.f32.xlu1 %v917_v51 }
 0xd1e   :  { %v1849_v52 = vpop.eup %1848 }
 0xd1f   :  { %v1035_v53 = vsel %vm140_vm2, %v1849_v52, 0.0 }
 0xd20   :  { %v1851_v54 = vpop.eup %1850  ;;  %1036 = vadd.xlane.f32.xlu0 %v1035_v53 }
 0xd21   :  { %v1038_v3 = vsel %vm140_vm2, %v1851_v54, 0.0 }
 0xd22   :  { %1039 = vadd.xlane.f32.xlu1 %v1038_v3 }
 0xd33   :  { %1046 = vrot.lane.b32.xlu1 %v2213_v63, %s1897_s1 }
 0xd36   :  { %925 = vrot.lane.b32.xlu0 %v2213_v63, %s1898_s25 }
 0xda5   :  { %v916_v56 = vpop.xlane.xlu0 %915 }
 0xda6   :  { %1852 = vrcp.f32 %v916_v56 }
 0xda7   :  { %v919_v57 = vpop.xlane.xlu1 %918 }
 0xda8   :  { %1854 = vrcp.f32 %v919_v57 }
 0xdad   :  { %v1037_v58 = vpop.xlane.xlu0 %1036 }
 0xdae   :  { %1856 = vrcp.f32 %v1037_v58 }
 0xdaf   :  { %v1040_v59 = vpop.xlane.xlu1 %1039 }
 0xdb0   :  { %v1853_v34 = vpop.eup %1852  ;;  %1858 = vrcp.f32 %v1040_v59  ;;  %v1811_v59 = vld [vmem:[%s2388_s6 + $0x38] sm:$0xff]  }
 0xdb1   :  { %v926_v60 = vpop.permute.xlu0 %925  ;;  %v922_v62 = vmul.f32 %v1853_v34, %v1845_v47  ;;  %v1812_v34 = vld [vmem:[%s2388_s6 + $0x40] sm:$0xff]  }
 0xdb2   :  { %v1855_v61 = vpop.eup %1854  ;;  %1697 = vmatpush3.bf16.msra.mxu1 %v926_v60  ;;  %v1813_v60 = vld [vmem:[%s2388_s6 + $0x48] sm:$0xff]  }
 0xdb3   :  { %v923_v2 = vmul.f32 %v1855_v61, %v1847_v50  ;;  %1708 = vmatprep.subr.bf16.mxu1 %v1892_v1  ;;  %v1047_v8 = vpop.permute.xlu1 %1046 }
 0xdb5   :  { %v924_v6 = vpack.c.bf16 %v923_v2, %v922_v62 }
 0xdb7   :  { %1699 = vmatmul.mubr.msk.bf16.vlgmr.msra.gmra.mrb[20].mxu1 %vm140_vm2, %v924_v6 }
 0xdb8   :  { %v1857_v63 = vpop.eup %1856  ;;  %1709 = vmatpush3.bf16.msra.mxu1 %v1047_v8  ;;  %1710 = vmatprep.mubr.msk.bf16.mxu1 %vm1893_vm0, %v1892_v1 }
 0xdb9   :  { %1722 = vmatprep.subr.bf16.mxu1 %v1892_v1  ;;  %v1043_v10 = vmul.f32 %v1857_v63, %v1849_v52 }
 0xdba   :  { %v1859_v9 = vpop.eup %1858 }
 0xdbb   :  { %v1044_v11 = vmul.f32 %v1859_v9, %v1851_v54  ;;  %v1200_v9 = vrot.slane %v2273_v39, %v485_v0  ;;  %v1815_v0 = vld [vmem:[%s2388_s6 + $0x58] sm:$0xff]  }
 0xdbd   :  { %v1045_v12 = vpack.c.bf16 %v1044_v11, %v1043_v10 }
 0xdbf   :  { %1711 = vmatmul.mubr.msk.bf16.vlgmr.msra.gmra.mrb[24].mxu1 %vm140_vm2, %v1045_v12  ;;  %v1814_v12 = vld [vmem:[%s2388_s6 + $0x50] sm:$0xff]  }
 0xdc0   :  { %1734 = vmatprep.mubr.msk.bf16.mxu1 %vm1893_vm0, %v1892_v1 }
 0xe8a   :  { %v965_v14 = vpop.f32.mrb[20].mxu1 }
 0xe8b   :  { %v1700_v15 = vpop.f32.mrb[21].mxu1 }
 0xe8c   :  { %v968_v18 = vpop.f32.mrb[22].mxu1 }
 0xe8d   :  { %v1701_v24 = vpop.f32.mrb[23].mxu1 }
 0xe92   :  { %v1086_v25 = vpop.f32.mrb[24].mxu1 }
 0xe93   :  { %v1712_v26 = vpop.f32.mrb[25].mxu1 }
 0xe94   :  { %v1089_v27 = vpop.f32.mrb[26].mxu1  ;;  %v1816_v26 = vld [vmem:[%s2390_s8 + $0x20] sm:$0xff]  }
 0xe95   :  { %v1777_v28 = vpack.i.bf16 %v1089_v27, %v1086_v25  ;;  %v1713_v29 = vpop.f32.mrb[27].mxu1 }
 0xe96   :  { %v1817_v29 = vld [vmem:[%s2390_s8 + $0x28] sm:$0xff]  }
 0xe97   :  { %1778 = vrot.lane.b32.xlu1 %v1777_v28, %s1899_s30 }
 0xf09   :  { %v1779_v30 = vpop.permute.xlu1 %1778 }
 0xf0a   :  { %v1781_v31 = vunpack.i.h.bf16 %v1779_v30  ;;  %v1780_v35 = vunpack.i.l.bf16 %v1779_v30 }
 0xf0c   :  { %v1102_v36 = vsel %vm140_vm2, %v968_v18, %v1781_v31  ;;  %v1101_v20 = vsel %vm140_vm2, %v965_v14, %v1780_v35  ;;  %v1206_v14 = vrot.slane %v2273_v39, %v491_v5 }
 0xf0d   :  { %v1103_v23 = vpack.c.bf16 %v1102_v36, %v1101_v20 }
 0xf0f   :  { %1719 = vmatmul.mubr.msk.bf16.vlgmr.msra.gmra.mrb[24].mxu0 %vm91_vm1, %v1103_v23 }
 0xf10   :  { %1746 = vmatprep.mubr.msk.bf16.mxu0 %vm1893_vm0, %v1892_v1  ;;  %1739 = vmatpush3.bf16.msra.mxu0 %v1816_v26 }
 0xf11   :  { %1740 = vmatprep.subr.bf16.mxu0 %v1892_v1 }
 0xf14   :  { %1741 = vmatpush3.bf16.msra.mxu0 %v1817_v29 }
 0xf15   :  { %1742 = vmatprep.subr.bf16.mxu0 %v1892_v1 }
 0xf18   :  { %1743 = vmatpush3.bf16.msra.mxu0 %v1818_v37 }
 0xf19   :  { %1744 = vmatprep.subr.bf16.mxu0 %v1892_v1 }
 0xf1c   :  { %1745 = vmatpush3.bf16.msra.mxu0 %v1819_v38 }
 0xfe2   :  { %v1162_v41 = vpop.f32.mrb[24].mxu0 }
 0xfe3   :  { %v1163_v19 = vadd.f32 %v1162_v41, %v1112_v40  ;;  %v1720_v42 = vpop.f32.mrb[25].mxu0 }
 0xfe4   :  { %v1165_v43 = vpop.f32.mrb[26].mxu0 }
 0xfe5   :  { %v1166_v44 = vadd.f32 %v1165_v43, %v1112_v40  ;;  %v1721_v21 = vpop.f32.mrb[27].mxu0  ;;  %v1169_v45 = vadd.f32 %v1163_v19, %v2201_v4 }
 0xfe7   :  { %v1171_v47 = vsel %vm91_vm1, %v1169_v45, 0.0  ;;  %v1170_v49 = vadd.f32 %v1166_v44, %v2203_v55  ;;  %v1810_v55 = vld [vmem:[%s2388_s6 + $0x30] sm:$0xff]  }
 0xfe8   :  { %1172 = vadd.xlane.f32.xlu0 %v1171_v47  ;;  %1723 = vmatpush3.bf16.msra.mxu1 %v1810_v55 }
 0xfe9   :  { %v1174_v50 = vsel %vm91_vm1, %v1170_v49, 0.0  ;;  %1724 = vmatprep.subr.bf16.mxu1 %v1892_v1 }
 0xfea   :  { %1175 = vadd.xlane.f32.xlu1 %v1174_v50 }
 0xfec   :  { %1725 = vmatpush3.bf16.msra.mxu1 %v1811_v59 }
 0xfed   :  { %1726 = vmatprep.subr.bf16.mxu1 %v1892_v1 }
 0xff0   :  { %1727 = vmatpush3.bf16.msra.mxu1 %v1812_v34 }
 0xff1   :  { %1728 = vmatprep.subr.bf16.mxu1 %v1892_v1 }
 0xff4   :  { %1729 = vmatpush3.bf16.msra.mxu1 %v1813_v60 }
 0xff5   :  { %1730 = vmatprep.subr.bf16.mxu1 %v1892_v1 }
 0xff8   :  { %1731 = vmatpush3.bf16.msra.mxu1 %v1814_v12 }
 0xff9   :  { %1732 = vmatprep.subr.bf16.mxu1 %v1892_v1  ;;  %v1356_v1 = vrot.slane %v2273_v39, %v667_v7 }
 0xffc   :  { %1733 = vmatpush3.bf16.msra.mxu1 %v1815_v0 }
0x1075   :  { %v1173_v51 = vpop.xlane.xlu0 %1172 }
0x1076   :  { %v1177_v52 = vmul.f32 0.03125, %v1173_v51 }
0x1077   :  { %v1176_v53 = vpop.xlane.xlu1 %1175 }
0x1078   :  { %v1179_v33 = vsub.f32 %v1169_v45, %v1177_v52  ;;  %v1178_v54 = vmul.f32 0.03125, %v1176_v53 }
0x107a   :  { %v1180_v3 = vsub.f32 %v1170_v49, %v1178_v54  ;;  %v1181_v56 = vmul.f32 %v1179_v33, %v1179_v33 }
0x107c   :  { %v1183_v57 = vsel %vm91_vm1, %v1181_v56, 0.0  ;;  %v1182_v58 = vmul.f32 %v1180_v3, %v1180_v3 }
0x107d   :  { %1184 = vadd.xlane.f32.xlu0 %v1183_v57 }
0x107e   :  { %v1186_v4 = vsel %vm91_vm1, %v1182_v58, 0.0 }
0x1081   :  { %1187 = vadd.xlane.f32.xlu0 %v1186_v4 }
0x110a   :  { %v1185_v61 = vpop.xlane.xlu0 %1184 }
0x110b   :  { %v1189_v62 = vmul.f32 0.03125, %v1185_v61 }
0x110d   :  { %v1191_v2 = vadd.f32 1e-05, %v1189_v62 }
0x110e   :  { %v1188_v6 = vpop.xlane.xlu0 %1187 }
0x110f   :  { %1860 = vrsqrt.f32 %v1191_v2  ;;  %v1190_v8 = vmul.f32 0.03125, %v1188_v6 }
0x1111   :  { %v1192_v63 = vadd.f32 1e-05, %v1190_v8 }
0x1113   :  { %1862 = vrsqrt.f32 %v1192_v63 }
0x1119   :  { %v1861_v10 = vpop.eup %1860 }
0x111a   :  { %v1195_v11 = vmul.f32 %v1861_v10, %v1179_v33  ;;  %v1541_v33 = vld [vmem:[%s2389_s7 + $0x1] ss:$0 sm:$0xff]  ;;  %s1901_s7 = smov [#allocation2]  }
0x111b   :  { %s1472_s8 = sshll.u32 %s1901_s7, 4  ;;  %s1473_s8 = int_to_ptr.vmem [resolvable:$true] %s1472_s8 }
0x111c   :  { %v1201_v13 = vmul.f32 %v1200_v9, %v1195_v11  ;;  %s1868_s3 = scalar_lea.vmem %s1473_s8, 256  ;;  %p1873_p1 = scmp.lt.s32.totalorder %s1473_s8, %s1473_s8 }
0x111d   :  { %v1863_v15 = vpop.eup %1862  ;;  %p1869_p0 = scmp.ne.s32.totalorder %s1473_s8, %s1868_s3  ;;  %p1874_p2 = scmp.lt.s32.totalorder %s1868_s3, %s1868_s3 }
0x111e   :  { %v1196_v16 = vmul.f32 %v1863_v15, %v1180_v3  ;;  %v1207_v24 = vadd.f32 %v1206_v14, %v1201_v13 }
0x111f   :  { %p1875_p3 = por %p1874_p2, %p1873_p1 }
0x1120   :  { %v1202_v18 = vmul.f32 %v1200_v9, %v1196_v16  ;;  %v1215_v28 = vrot.slane %v1207_v24, 1  ;;  %v1209_v40 = vrot.slane %v1207_v24, 7 }
0x1121   :  { %p1876_p4 = pnand %p1875_p3, %p1869_p0 }
0x1122   :  { %v1208_v25 = vadd.f32 %v1206_v14, %v1202_v18 }
0x1124   :  { %v1782_v27 = vpack.i.bf16 %v1208_v25, %v1207_v24  ;;  %v1216_v5 = vrot.slane %v1208_v25, 1  ;;  %v1210_v23 = vrot.slane %v1208_v25, 7 }
0x1126   :  { %1783 = vrot.lane.b32.xlu1 %v1782_v27, %s1900_s11  ;;  %v1217_v30 = vsel %vm516_vm3, %v1215_v28, %v1216_v5  ;;  %v1218_v31 = vsel %vm516_vm3, %v1216_v5, %v1215_v28  ;;  %v1211_v43 = vsel %vm497_vm6, %v1209_v40, %v1210_v23  ;;  %v1212_v17 = vsel %vm497_vm6, %v1210_v23, %v1209_v40 }
0x1127   :  { %v1219_v35 = vsel %vm523_vm4, %v1217_v30, 0.0  ;;  %v1220_v36 = vsel %vm524_vm5, %v1218_v31, 0.0  ;;  %v1213_v22 = vsel %vm502_vm7, %v1212_v17, 0.0  ;;  %v1214_v21 = vsel %vm503_vm8, %v1211_v43, 0.0 }
0x1128   :  { %v1787_v20 = vpack.i.bf16 %v1220_v36, %v1219_v35  ;;  %v1456_v31 = vrot.slane %v2273_v39, %v767_v46 }
0x112a   :  { %1788 = vrot.lane.b32.xlu0 %v1787_v20, %s1898_s25  ;;  %v1462_v20 = vrot.slane %v2273_v39, %v773_v48 }
0x1198   :  { %v1784_v41 = vpop.permute.xlu1 %1783 }
0x1199   :  { %v1786_v19 = vunpack.i.h.bf16 %v1784_v41  ;;  %v1785_v42 = vunpack.i.l.bf16 %v1784_v41 }
0x119b   :  { %v1237_v49 = vsel %vm91_vm1, %v1213_v22, %v1785_v42  ;;  %v1238_v50 = vsel %vm91_vm1, %v1214_v21, %v1786_v19 }
0x119c   :  { %v1789_v44 = vpop.permute.xlu0 %1788 }
0x119d   :  { %v1791_v45 = vunpack.i.h.bf16 %v1789_v44  ;;  %v1790_v47 = vunpack.i.l.bf16 %v1789_v44 }
0x119f   :  { %v1239_v51 = vsel %vm551_vm9, %v1237_v49, %v1790_v47  ;;  %v1240_v52 = vsel %vm551_vm9, %v1238_v50, %v1791_v45 }
0x11a0   :  { %v1241_v53 = vpack.c.bf16 %v1240_v52, %v1239_v51 }
0x11a2   :  { %1735 = vmatmul.mubr.msk.bf16.vlgmr.msra.gmra.mrb[28].mxu1 %vm609_vm10, %v1241_v53 }
0x1275   :  { %v1334_v54 = vpop.f32.mrb[28].mxu1 }
0x1276   :  { %v1335_v3 = vadd.f32 %v1541_v33, %v1334_v54  ;;  %v1736_v56 = vpop.f32.mrb[29].mxu1 }
0x1277   :  { %v1337_v57 = vpop.f32.mrb[30].mxu1 }
0x1278   :  { %v1338_v58 = vadd.f32 %v1541_v33, %v1337_v57  ;;  %v1737_v4 = vpop.f32.mrb[31].mxu1  ;;  %v1341_v55 = vmax.f32 %v1335_v3, 0.0 }
0x127a   :  { %v1342_v59 = vmax.f32 %v1338_v58, 0.0 }
0x127c   :  { %v1343_v34 = vpack.c.bf16 %v1342_v59, %v1341_v55 }
0x127e   :  { %1747 = vmatmul.mubr.msk.bf16.vlgmr.msra.gmra.mrb[28].mxu0 %vm551_vm9, %v1343_v34 }
0x1351   :  { %v1418_v60 = vpop.f32.mrb[28].mxu0 }
0x1352   :  { %v1419_v61 = vadd.f32 %v1418_v60, %v1356_v1  ;;  %v1748_v62 = vpop.f32.mrb[29].mxu0 }
0x1353   :  { %v1421_v2 = vpop.f32.mrb[30].mxu0 }
0x1354   :  { %v1422_v6 = vadd.f32 %v1421_v2, %v1356_v1  ;;  %v1749_v8 = vpop.f32.mrb[31].mxu0  ;;  %v1425_v63 = vadd.f32 %v1419_v61, %v1207_v24 }
0x1356   :  { %v1427_v9 = vsel %vm91_vm1, %v1425_v63, 0.0  ;;  %v1426_v10 = vadd.f32 %v1422_v6, %v1208_v25 }
0x1357   :  { %1428 = vadd.xlane.f32.xlu1 %v1427_v9 }
0x1358   :  { %v1430_v11 = vsel %vm91_vm1, %v1426_v10, 0.0 }
0x1359   :  { %1431 = vadd.xlane.f32.xlu0 %v1430_v11 }
0x13e4   :  { %v1429_v12 = vpop.xlane.xlu1 %1428 }
0x13e5   :  { %v1433_v13 = vmul.f32 0.03125, %v1429_v12 }
0x13e6   :  { %v1432_v14 = vpop.xlane.xlu0 %1431 }
0x13e7   :  { %v1435_v15 = vsub.f32 %v1425_v63, %v1433_v13  ;;  %v1434_v16 = vmul.f32 0.03125, %v1432_v14 }
0x13e9   :  { %v1436_v7 = vsub.f32 %v1426_v10, %v1434_v16  ;;  %v1437_v0 = vmul.f32 %v1435_v15, %v1435_v15 }
0x13eb   :  { %v1439_v18 = vsel %vm91_vm1, %v1437_v0, 0.0  ;;  %v1438_v26 = vmul.f32 %v1436_v7, %v1436_v7 }
0x13ec   :  { %1440 = vadd.xlane.f32.xlu1 %v1439_v18 }
0x13ed   :  { %v1442_v24 = vsel %vm91_vm1, %v1438_v26, 0.0 }
0x13ee   :  { %1443 = vadd.xlane.f32.xlu0 %v1442_v24 }
0x1479   :  { %v1441_v27 = vpop.xlane.xlu1 %1440 }
0x147a   :  { %v1445_v25 = vmul.f32 0.03125, %v1441_v27 }
0x147b   :  { %v1444_v28 = vpop.xlane.xlu0 %1443 }
0x147c   :  { %v1447_v5 = vadd.f32 1e-05, %v1445_v25  ;;  %v1446_v29 = vmul.f32 0.03125, %v1444_v28 }
0x147e   :  { %1864 = vrsqrt.f32 %v1447_v5  ;;  %v1448_v30 = vadd.f32 1e-05, %v1446_v29 }
0x1480   :  { %1866 = vrsqrt.f32 %v1448_v30 }
0x1488   :  { %v1865_v35 = vpop.eup %1864 }
0x1489   :  { %v1451_v36 = vmul.f32 %v1865_v35, %v1435_v15 }
0x148a   :  { %v1867_v23 = vpop.eup %1866 }
0x148b   :  { %v1452_v40 = vmul.f32 %v1867_v23, %v1436_v7  ;;  %v1457_v41 = vmul.f32 %v1456_v31, %v1451_v36 }
0x148d   :  { %v1458_v19 = vmul.f32 %v1456_v31, %v1452_v40  ;;  %v1463_v42 = vadd.f32 %v1462_v20, %v1457_v41 }
0x148f   :  { %v1464_v43 = vadd.f32 %v1462_v20, %v1458_v19  ;;  %1465 = vst.msk [vmem:[#allocation2] sm:$0xff] %vm91_vm1, %v1463_v42 }
0x1491   :  { %1466 = vst.msk [vmem:[#allocation2 + $0x8] sm:$0xff] %vm91_vm1, %v1464_v43 }
0x1492   :  { %1879 = shalt.err (!%p1876_p4)
}
0x1493   :  { %s1880_s20 = scalar_lea.hbm %s2391_s9, 256 }
0x1494   :  { %p1881_p5 = scmp.ne.s32.totalorder %s2391_s9, %s1880_s20  ;;  %p1884_p6 = scmp.lt.u32.totalorder %s1880_s20, %s2391_s9 }
0x1496   :  { %p1886_p7 = pnand %p1884_p6, %p1881_p5 }
0x1498   :  { %1889 = shalt.err (!%p1886_p7)
}
0x1499   :  { %s1902_s26 = smov 128   ;;  %s1903_s27 = smov 8  }
0x149a   :  { %1478 = dma.vmem_to_hbm [thread:$0]  %s1473_s8, 256, %s2391_s9, [#allocation3], %s1902_s26, %s1902_s26, %s1903_s27  }
0x149b   :  { %1890 = dma.done.wait [#allocation3], 256  }
0x149c   :  { %1891 = vsyncadd [#allocation3], 4294967040 }
0x149d   :  { %1482 = vsyncpa [#allocation3], 1 }

</bundles_post_ra>
